<compile_context>
chip_gen: v6e
topology: v6e:2x2x1
jax: 0.10.0
libtpu: 0.0.40
codegen_flags: <defaults>
</compile_context>

<pallas_src>
import jax
import jax.numpy as jnp
from jax.experimental import pallas as pl

# ---------------- small ViT configuration (consistent with the module) -------
IMG = 16          # img_size
PATCH = 8         # patch_size
IN_CH = 3         # in_chans
EMBED = 32        # embed_dim
DEPTH = 2         # depth
HEADS = 4         # num_heads
MLP_RATIO = 4
NUM_CLASSES = 10
B = 2

NP = (IMG // PATCH) * (IMG // PATCH)   # num_patches = 4
N = NP + 1                             # tokens incl. cls = 5
BN = B * N                             # valid token rows = 10
BNP = 16                               # token rows padded to 8-sublane multiple
HD = EMBED // HEADS                    # head dim = 8
HIDDEN = EMBED * MLP_RATIO             # mlp hidden = 128
CPP = IN_CH * PATCH * PATCH            # flattened patch = 192
HEAD_PAD = 128                         # lane-dense padded classifier width
LN_EPS = 1e-5
SCALE = HD ** -0.5
NEG_INF = -1e30

# ---------------- packed constant-slab layout (rows x 128 lanes, f32) --------
SLAB_W = 128
EMB_OFF = 0                    # (BNP, EMBED)  additive embed term (cls/pos/bias)
BIAS_OFF = EMB_OFF + BNP       # (BNP, BNP)    additive attention mask
PW_OFF = BIAS_OFF + BNP        # (CPP, EMBED)  patch-embed weight
HW_OFF = PW_OFF + CPP          # (EMBED, 128)  classifier weight (lane-padded)
FIN_OFF = HW_OFF + EMBED       # 8 rows: [norm_w, norm_b, head_b, ...]
DEPTH_OFF = FIN_OFF + 8        # per-depth parameter blocks start here
QKV_R = 0                      # (EMBED, 3*EMBED) fused qkv weight (q pre-scaled)
PRJ_R = QKV_R + EMBED          # (EMBED, EMBED)   output projection weight
W1_R = PRJ_R + EMBED           # (EMBED, HIDDEN)  mlp fc1 weight
W2_R = W1_R + EMBED            # (HIDDEN, EMBED)  mlp fc2 weight
VEC_R = W2_R + HIDDEN          # 8 rows: [ln1w, ln1b, ln2w, ln2b, bproj, b2, b1]
PER_DEPTH = VEC_R + 8
SLAB_ROWS = DEPTH_OFF + DEPTH * PER_DEPTH      # 728 rows (multiple of 8)


# ---------------------------- kernel helpers ---------------------------------
def _layernorm(x, g, b):
    # x: (rows, D); g, b: (1, D)  -- torch.nn.LayerNorm semantics (biased var)
    mu = jnp.mean(x, axis=-1, keepdims=True)
    xc = x - mu
    var = jnp.mean(xc * xc, axis=-1, keepdims=True)
    return xc * jax.lax.rsqrt(var + LN_EPS) * g + b


# --------------------------- fused ViT kernel ---------------------------------
def vit_kernel(xp_ref, slab_ref, o_ref):
    # ---- patch embed: one (BNP, CPP) @ (CPP, EMBED) matmul.  cls/pad rows of
    # xp are zero; the embed-add rows carry {conv bias | cls token} + pos embed.
    patch_w = slab_ref[PW_OFF:PW_OFF + CPP, 0:EMBED]          # (CPP, E)
    embed_add = slab_ref[EMB_OFF:EMB_OFF + BNP, 0:EMBED]      # (BNP, E)
    x = (jnp.dot(xp_ref[...], patch_w, preferred_element_type=jnp.float32)
         + embed_add)                                         # (BNP, E)

    # Block-diagonal additive mask: no cross-batch / no valid->pad attention.
    attn_bias = slab_ref[BIAS_OFF:BIAS_OFF + BNP, 0:BNP]      # (BNP, BNP)

    for d in range(DEPTH):            # small static constant -> unrolled
        base = DEPTH_OFF + d * PER_DEPTH
        wqkv = slab_ref[base + QKV_R: base + QKV_R + EMBED, 0:3 * EMBED]
        wproj = slab_ref[base + PRJ_R: base + PRJ_R + EMBED, 0:EMBED]
        w1 = slab_ref[base + W1_R: base + W1_R + EMBED, 0:HIDDEN]
        w2 = slab_ref[base + W2_R: base + W2_R + HIDDEN, 0:EMBED]
        vec = slab_ref[base + VEC_R: base + VEC_R + 8, :]     # (8, 128) aligned
        ln1w, ln1b = vec[0:1, 0:EMBED], vec[1:2, 0:EMBED]
        ln2w, ln2b = vec[2:3, 0:EMBED], vec[3:4, 0:EMBED]
        bproj, b2 = vec[4:5, 0:EMBED], vec[5:6, 0:EMBED]
        b1 = vec[6:7, 0:HIDDEN]

        # ---- attention branch: LN1 -> fused qkv -> per-head softmax -> proj --
        h = _layernorm(x, ln1w, ln1b)                         # (BNP, E)
        qkv = jnp.dot(h, wqkv, preferred_element_type=jnp.float32)   # (BNP, 3E)

        ctx_heads = []
        for hi in range(HEADS):
            qh = qkv[:, hi * HD:(hi + 1) * HD]                        # (BNP, HD)
            kh = qkv[:, EMBED + hi * HD:EMBED + (hi + 1) * HD]        # (BNP, HD)
            vh = qkv[:, 2 * EMBED + hi * HD:2 * EMBED + (hi + 1) * HD]
            s = jnp.dot(qh, kh.T, preferred_element_type=jnp.float32) + attn_bias
            s = s - jnp.max(s, axis=-1, keepdims=True)        # XLU slot, ~free
            e = jnp.exp(s)
            p = e * pl.reciprocal(jnp.sum(e, axis=-1, keepdims=True), approx=True)
            ctx_heads.append(jnp.dot(p, vh, preferred_element_type=jnp.float32))
        ctx = jnp.concatenate(ctx_heads, axis=-1)             # (BNP, E)
        x = x + jnp.dot(ctx, wproj, preferred_element_type=jnp.float32) + bproj

        # ---- MLP branch: LN2 -> fc1 -> GELU -> fc2 ----
        h2 = _layernorm(x, ln2w, ln2b)
        a = jnp.dot(h2, w1, preferred_element_type=jnp.float32) + b1
        # TODO(synk): torch nn.GELU default is erf-exact; tanh-approx GELU used here.
        a = jax.nn.gelu(a, approximate=True)
        x = x + jnp.dot(a, w2, preferred_element_type=jnp.float32) + b2

    # ---- final LayerNorm + classifier into a lane-dense 128-wide slab ----
    norm_w = slab_ref[FIN_OFF:FIN_OFF + 1, 0:EMBED]
    norm_b = slab_ref[FIN_OFF + 1:FIN_OFF + 2, 0:EMBED]
    head_b = slab_ref[FIN_OFF + 2:FIN_OFF + 3, :]             # (1, 128)
    head_w = slab_ref[HW_OFF:HW_OFF + EMBED, :]               # (E, 128)
    f = _layernorm(x, norm_w, norm_b)                         # (BNP, E)
    o_ref[...] = (jnp.dot(f, head_w, preferred_element_type=jnp.float32)
                  + head_b)                                   # (BNP, 128)


# ---------------------------- wrappers ----------------------------------------
def extract_patches(x):
    """(B, C, H, W) NCHW -> (B, NP, C*P*P), flattened in (C, ph, pw) order
    to match the flattened Conv2d weight."""
    b, c, h, w = x.shape
    gh, gw = h // PATCH, w // PATCH
    x = x.reshape(b, c, gh, PATCH, gw, PATCH)
    x = x.transpose(0, 2, 4, 1, 3, 5)            # (B, gh, gw, C, ph, pw)
    return x.reshape(b, gh * gw, c * PATCH * PATCH)


def prepare_kernel_params(params):
    """Pack every constant (weights, biases, pos/cls additive term, classifier
    and attention mask) into ONE lane-padded f32 slab.  Pure layout plumbing,
    done once outside the kernel."""
    slab = jnp.zeros((SLAB_ROWS, SLAB_W), jnp.float32)

    # Row-wise additive term for the (BNP, E) embedding slab:
    #   cls rows:   cls_token + pos_embed[0]
    #   patch rows: conv bias + pos_embed[1 + p]
    #   pad rows:   0
    per_batch_add = jnp.concatenate(
        [params["cls_token"].reshape(1, EMBED),
         jnp.broadcast_to(params["patch_b"], (NP, EMBED))], axis=0)
    per_batch_add = per_batch_add + params["pos_embed"].reshape(N, EMBED)
    embed_add = jnp.tile(per_batch_add, (B, 1))               # (BN, E)
    slab = slab.at[EMB_OFF:EMB_OFF + BN, :EMBED].set(embed_add)

    # Additive attention mask over the padded 16-token slab.  Pad tokens get
    # their own batch ids (arange // N) so every row keeps >=1 unmasked column
    # (no fully-masked row -> no NaN), and valid rows never attend to pad rows.
    batch_ids = jnp.arange(BNP) // N
    same = batch_ids[:, None] == batch_ids[None, :]
    attn_bias = jnp.where(same, 0.0, NEG_INF).astype(jnp.float32)
    slab = slab.at[BIAS_OFF:BIAS_OFF + BNP, :BNP].set(attn_bias)

    slab = slab.at[PW_OFF:PW_OFF + CPP, :EMBED].set(params["patch_w"])
    slab = slab.at[HW_OFF:HW_OFF + EMBED, :NUM_CLASSES].set(params["head_w"])
    slab = slab.at[FIN_OFF, :EMBED].set(params["norm_w"].reshape(EMBED))
    slab = slab.at[FIN_OFF + 1, :EMBED].set(params["norm_b"].reshape(EMBED))
    slab = slab.at[FIN_OFF + 2, :NUM_CLASSES].set(params["head_b"].reshape(NUM_CLASSES))

    for d, blk in enumerate(params["blocks"]):
        (ln1w, ln1b, wqkv, wproj, bproj, ln2w, ln2b, w1, b1, w2, b2) = blk
        base = DEPTH_OFF + d * PER_DEPTH
        # fold the qk scale into the q columns of the fused qkv weight
        wqkv_scaled = wqkv.at[:, :EMBED].multiply(SCALE)
        slab = slab.at[base + QKV_R: base + QKV_R + EMBED, :3 * EMBED].set(wqkv_scaled)
        slab = slab.at[base + PRJ_R: base + PRJ_R + EMBED, :EMBED].set(wproj)
        slab = slab.at[base + W1_R: base + W1_R + EMBED, :HIDDEN].set(w1)
        slab = slab.at[base + W2_R: base + W2_R + HIDDEN, :EMBED].set(w2)
        slab = slab.at[base + VEC_R + 0, :EMBED].set(ln1w.reshape(EMBED))
        slab = slab.at[base + VEC_R + 1, :EMBED].set(ln1b.reshape(EMBED))
        slab = slab.at[base + VEC_R + 2, :EMBED].set(ln2w.reshape(EMBED))
        slab = slab.at[base + VEC_R + 3, :EMBED].set(ln2b.reshape(EMBED))
        slab = slab.at[base + VEC_R + 4, :EMBED].set(bproj.reshape(EMBED))
        slab = slab.at[base + VEC_R + 5, :EMBED].set(b2.reshape(EMBED))
        slab = slab.at[base + VEC_R + 6, :HIDDEN].set(b1.reshape(HIDDEN))
    return slab


@jax.jit
def vit_forward(x, slab):
    b = x.shape[0]
    xp = extract_patches(x)                                   # (B, NP, CPP)
    # Insert a zero row per batch at the cls position (cls rows get 0 @ W = 0
    # exactly) and zero-pad from BN=10 to BNP=16 rows (8-sublane multiple).
    xp_full = jnp.concatenate(
        [jnp.zeros((b, 1, CPP), jnp.float32), xp], axis=1).reshape(b * N, CPP)
    xp_pad = jnp.zeros((BNP, CPP), jnp.float32).at[:BN].set(xp_full)

    out_pad = pl.pallas_call(
        vit_kernel,
        out_shape=jax.ShapeDtypeStruct((BNP, HEAD_PAD), jnp.float32),
    )(xp_pad, slab)

    # take the cls row of each batch; drop row padding and 128->NUM_CLASSES lanes
    return out_pad[:BN].reshape(b, N, HEAD_PAD)[:, 0, :NUM_CLASSES]


# ------------------------- deterministic parameter init ------------------------
def trunc_normal(key, shape, std=0.02):
    return jax.random.truncated_normal(key, -2.0, 2.0, shape, jnp.float32) * std


def init_params(key):
    keys = iter(jax.random.split(key, 64))
    params = {}
    # PatchEmbed conv (Conv2d(in, D, k=P, s=P)) flattened to a matmul weight.
    wconv = trunc_normal(next(keys), (EMBED, IN_CH, PATCH, PATCH), std=0.02)
    params["patch_w"] = wconv.reshape(EMBED, IN_CH * PATCH * PATCH).T   # (CPP, D)
    params["patch_b"] = jnp.zeros((1, EMBED), jnp.float32)
    params["cls_token"] = trunc_normal(next(keys), (1, 1, EMBED))
    params["pos_embed"] = trunc_normal(next(keys), (1, N, EMBED))

    blocks = []
    for _ in range(DEPTH):
        ln1w = jnp.ones((1, EMBED), jnp.float32)
        ln1b = jnp.zeros((1, EMBED), jnp.float32)
        wqkv = trunc_normal(next(keys), (EMBED, 3 * EMBED))   # (in, out); qkv_bias=False
        wproj = trunc_normal(next(keys), (EMBED, EMBED))
        bproj = jnp.zeros((1, EMBED), jnp.float32)
        ln2w = jnp.ones((1, EMBED), jnp.float32)
        ln2b = jnp.zeros((1, EMBED), jnp.float32)
        w1 = trunc_normal(next(keys), (EMBED, HIDDEN))
        b1 = jnp.zeros((1, HIDDEN), jnp.float32)
        w2 = trunc_normal(next(keys), (HIDDEN, EMBED))
        b2 = jnp.zeros((1, EMBED), jnp.float32)
        blocks.append((ln1w, ln1b, wqkv, wproj, bproj, ln2w, ln2b, w1, b1, w2, b2))
    params["blocks"] = blocks

    params["norm_w"] = jnp.ones((1, EMBED), jnp.float32)
    params["norm_b"] = jnp.zeros((1, EMBED), jnp.float32)
    params["head_w"] = trunc_normal(next(keys), (EMBED, NUM_CLASSES))
    params["head_b"] = jnp.zeros((1, NUM_CLASSES), jnp.float32)
    return params


# ------------------------------------ main --------------------------------------
if __name__ == "__main__":
    key = jax.random.PRNGKey(0)
    k_params, k_x = jax.random.split(key)
    params = init_params(k_params)
    slab = prepare_kernel_params(params)
    x = jax.random.normal(k_x, (B, IN_CH, IMG, IMG), jnp.float32)   # NCHW input

    logits = vit_forward(x, slab)
    logits = jax.block_until_ready(logits)

    assert logits.shape == (B, NUM_CLASSES)
    assert bool(jnp.all(jnp.isfinite(logits)))
    print("KERNEL_OK")
</pallas_src>

<mosaic_0001>
module attributes {stable_mosaic.version = 11 : i64} {
  func.func @vit_kernel(%arg0: memref<16x192xf32, #tpu.memory_space<vmem>>, %arg1: memref<728x128xf32, #tpu.memory_space<vmem>>, %arg2: memref<16x128xf32, #tpu.memory_space<vmem>>) attributes {dimension_semantics = [], scalar_prefetch = 0 : i64, scratch_operands = 0 : i64, tpu.core_type = #tpu.core_type<tc>} {
    %c32 = arith.constant 32 : index
    %c0 = arith.constant 0 : index
    %0 = vector.load %arg1[%c32, %c0] : memref<728x128xf32, #tpu.memory_space<vmem>>, vector<192x32xf32>
    %c0_0 = arith.constant 0 : index
    %c0_1 = arith.constant 0 : index
    %1 = vector.load %arg1[%c0_0, %c0_1] : memref<728x128xf32, #tpu.memory_space<vmem>>, vector<16x32xf32>
    %c0_2 = arith.constant 0 : index
    %c0_3 = arith.constant 0 : index
    %2 = vector.load %arg0[%c0_2, %c0_3] : memref<16x192xf32, #tpu.memory_space<vmem>>, vector<16x192xf32>
    %cst = arith.constant dense<0.000000e+00> : vector<16x32xf32>
    %3 = tpu.matmul %2, %0, %cst {dimension_numbers = #tpu.dot_dimension_numbers<[1], [0], [0], [1], [0, 0, 1, 1], [], []>} : vector<16x192xf32>, vector<192x32xf32>, vector<16x32xf32> -> vector<16x32xf32>
    %4 = arith.addf %3, %1 : vector<16x32xf32>
    %c16 = arith.constant 16 : index
    %c0_4 = arith.constant 0 : index
    %5 = vector.load %arg1[%c16, %c0_4] : memref<728x128xf32, #tpu.memory_space<vmem>>, vector<16x16xf32>
    %c264 = arith.constant 264 : index
    %c0_5 = arith.constant 0 : index
    %6 = vector.load %arg1[%c264, %c0_5] : memref<728x128xf32, #tpu.memory_space<vmem>>, vector<32x96xf32>
    %c296 = arith.constant 296 : index
    %c0_6 = arith.constant 0 : index
    %7 = vector.load %arg1[%c296, %c0_6] : memref<728x128xf32, #tpu.memory_space<vmem>>, vector<32x32xf32>
    %c328 = arith.constant 328 : index
    %c0_7 = arith.constant 0 : index
    %8 = vector.load %arg1[%c328, %c0_7] : memref<728x128xf32, #tpu.memory_space<vmem>>, vector<32x128xf32>
    %c360 = arith.constant 360 : index
    %c0_8 = arith.constant 0 : index
    %9 = vector.load %arg1[%c360, %c0_8] : memref<728x128xf32, #tpu.memory_space<vmem>>, vector<128x32xf32>
    %c488 = arith.constant 488 : index
    %c0_9 = arith.constant 0 : index
    %10 = vector.load %arg1[%c488, %c0_9] : memref<728x128xf32, #tpu.memory_space<vmem>>, vector<8x128xf32>
    %11 = vector.extract_strided_slice %10 {offsets = [0, 0], sizes = [1, 32], strides = [1, 1]} : vector<8x128xf32> to vector<1x32xf32>
    %12 = vector.extract_strided_slice %10 {offsets = [1, 0], sizes = [1, 32], strides = [1, 1]} : vector<8x128xf32> to vector<1x32xf32>
    %13 = vector.extract_strided_slice %10 {offsets = [2, 0], sizes = [1, 32], strides = [1, 1]} : vector<8x128xf32> to vector<1x32xf32>
    %14 = vector.extract_strided_slice %10 {offsets = [3, 0], sizes = [1, 32], strides = [1, 1]} : vector<8x128xf32> to vector<1x32xf32>
    %15 = vector.extract_strided_slice %10 {offsets = [4, 0], sizes = [1, 32], strides = [1, 1]} : vector<8x128xf32> to vector<1x32xf32>
    %16 = vector.extract_strided_slice %10 {offsets = [5, 0], sizes = [1, 32], strides = [1, 1]} : vector<8x128xf32> to vector<1x32xf32>
    %17 = vector.extract_strided_slice %10 {offsets = [6, 0], sizes = [1, 128], strides = [1, 1]} : vector<8x128xf32> to vector<1x128xf32>
    %cst_10 = arith.constant dense<0.000000e+00> : vector<16xf32>
    %18 = vector.multi_reduction <add>, %4, %cst_10 [1] : vector<16x32xf32> to vector<16xf32>
    %19 = vector.shape_cast %18 : vector<16xf32> to vector<16x1xf32>
    %cst_11 = arith.constant 3.200000e+01 : f32
    %20 = vector.broadcast %cst_11 : f32 to vector<16x1xf32>
    %21 = arith.divf %19, %20 : vector<16x1xf32>
    %22 = vector.broadcast %21 : vector<16x1xf32> to vector<16x32xf32>
    %23 = arith.subf %4, %22 : vector<16x32xf32>
    %24 = arith.mulf %23, %23 : vector<16x32xf32>
    %cst_12 = arith.constant dense<0.000000e+00> : vector<16xf32>
    %25 = vector.multi_reduction <add>, %24, %cst_12 [1] : vector<16x32xf32> to vector<16xf32>
    %26 = vector.shape_cast %25 : vector<16xf32> to vector<16x1xf32>
    %cst_13 = arith.constant 3.200000e+01 : f32
    %27 = vector.broadcast %cst_13 : f32 to vector<16x1xf32>
    %28 = arith.divf %26, %27 : vector<16x1xf32>
    %cst_14 = arith.constant 9.99999974E-6 : f32
    %29 = vector.broadcast %cst_14 : f32 to vector<16x1xf32>
    %30 = arith.addf %28, %29 : vector<16x1xf32>
    %31 = math.rsqrt %30 : vector<16x1xf32>
    %32 = vector.broadcast %31 : vector<16x1xf32> to vector<16x32xf32>
    %33 = arith.mulf %23, %32 : vector<16x32xf32>
    %34 = vector.broadcast %11 : vector<1x32xf32> to vector<16x32xf32>
    %35 = arith.mulf %33, %34 : vector<16x32xf32>
    %36 = vector.broadcast %12 : vector<1x32xf32> to vector<16x32xf32>
    %37 = arith.addf %35, %36 : vector<16x32xf32>
    %cst_15 = arith.constant dense<0.000000e+00> : vector<16x96xf32>
    %38 = tpu.matmul %37, %6, %cst_15 {dimension_numbers = #tpu.dot_dimension_numbers<[1], [0], [0], [1], [0, 0, 1, 1], [], []>} : vector<16x32xf32>, vector<32x96xf32>, vector<16x96xf32> -> vector<16x96xf32>
    %39 = vector.extract_strided_slice %38 {offsets = [0, 0], sizes = [16, 8], strides = [1, 1]} : vector<16x96xf32> to vector<16x8xf32>
    %40 = vector.extract_strided_slice %38 {offsets = [0, 32], sizes = [16, 8], strides = [1, 1]} : vector<16x96xf32> to vector<16x8xf32>
    %41 = vector.extract_strided_slice %38 {offsets = [0, 64], sizes = [16, 8], strides = [1, 1]} : vector<16x96xf32> to vector<16x8xf32>
    %42 = tpu.transpose %40, [1, 0] : vector<16x8xf32> -> vector<8x16xf32>
    %cst_16 = arith.constant dense<0.000000e+00> : vector<16x16xf32>
    %43 = tpu.matmul %39, %42, %cst_16 {dimension_numbers = #tpu.dot_dimension_numbers<[1], [0], [0], [1], [0, 0, 1, 1], [], []>} : vector<16x8xf32>, vector<8x16xf32>, vector<16x16xf32> -> vector<16x16xf32>
    %44 = arith.addf %43, %5 : vector<16x16xf32>
    %cst_17 = arith.constant dense<0xFF800000> : vector<16xf32>
    %45 = vector.multi_reduction <maximumf>, %44, %cst_17 [1] : vector<16x16xf32> to vector<16xf32>
    %46 = vector.shape_cast %45 : vector<16xf32> to vector<16x1xf32>
    %47 = vector.broadcast %46 : vector<16x1xf32> to vector<16x16xf32>
    %48 = arith.subf %44, %47 : vector<16x16xf32>
    %49 = math.exp %48 : vector<16x16xf32>
    %cst_18 = arith.constant dense<0.000000e+00> : vector<16xf32>
    %50 = vector.multi_reduction <add>, %49, %cst_18 [1] : vector<16x16xf32> to vector<16xf32>
    %51 = vector.shape_cast %50 : vector<16xf32> to vector<16x1xf32>
    %52 = tpu.reciprocal %51 {approx = true} : vector<16x1xf32> -> vector<16x1xf32>
    %53 = vector.broadcast %52 : vector<16x1xf32> to vector<16x16xf32>
    %54 = arith.mulf %49, %53 : vector<16x16xf32>
    %cst_19 = arith.constant dense<0.000000e+00> : vector<16x8xf32>
    %55 = tpu.matmul %54, %41, %cst_19 {dimension_numbers = #tpu.dot_dimension_numbers<[1], [0], [0], [1], [0, 0, 1, 1], [], []>} : vector<16x16xf32>, vector<16x8xf32>, vector<16x8xf32> -> vector<16x8xf32>
    %56 = vector.extract_strided_slice %38 {offsets = [0, 8], sizes = [16, 8], strides = [1, 1]} : vector<16x96xf32> to vector<16x8xf32>
    %57 = vector.extract_strided_slice %38 {offsets = [0, 40], sizes = [16, 8], strides = [1, 1]} : vector<16x96xf32> to vector<16x8xf32>
    %58 = vector.extract_strided_slice %38 {offsets = [0, 72], sizes = [16, 8], strides = [1, 1]} : vector<16x96xf32> to vector<16x8xf32>
    %59 = tpu.transpose %57, [1, 0] : vector<16x8xf32> -> vector<8x16xf32>
    %cst_20 = arith.constant dense<0.000000e+00> : vector<16x16xf32>
    %60 = tpu.matmul %56, %59, %cst_20 {dimension_numbers = #tpu.dot_dimension_numbers<[1], [0], [0], [1], [0, 0, 1, 1], [], []>} : vector<16x8xf32>, vector<8x16xf32>, vector<16x16xf32> -> vector<16x16xf32>
    %61 = arith.addf %60, %5 : vector<16x16xf32>
    %cst_21 = arith.constant dense<0xFF800000> : vector<16xf32>
    %62 = vector.multi_reduction <maximumf>, %61, %cst_21 [1] : vector<16x16xf32> to vector<16xf32>
    %63 = vector.shape_cast %62 : vector<16xf32> to vector<16x1xf32>
    %64 = vector.broadcast %63 : vector<16x1xf32> to vector<16x16xf32>
    %65 = arith.subf %61, %64 : vector<16x16xf32>
    %66 = math.exp %65 : vector<16x16xf32>
    %cst_22 = arith.constant dense<0.000000e+00> : vector<16xf32>
    %67 = vector.multi_reduction <add>, %66, %cst_22 [1] : vector<16x16xf32> to vector<16xf32>
    %68 = vector.shape_cast %67 : vector<16xf32> to vector<16x1xf32>
    %69 = tpu.reciprocal %68 {approx = true} : vector<16x1xf32> -> vector<16x1xf32>
    %70 = vector.broadcast %69 : vector<16x1xf32> to vector<16x16xf32>
    %71 = arith.mulf %66, %70 : vector<16x16xf32>
    %cst_23 = arith.constant dense<0.000000e+00> : vector<16x8xf32>
    %72 = tpu.matmul %71, %58, %cst_23 {dimension_numbers = #tpu.dot_dimension_numbers<[1], [0], [0], [1], [0, 0, 1, 1], [], []>} : vector<16x16xf32>, vector<16x8xf32>, vector<16x8xf32> -> vector<16x8xf32>
    %73 = vector.extract_strided_slice %38 {offsets = [0, 16], sizes = [16, 8], strides = [1, 1]} : vector<16x96xf32> to vector<16x8xf32>
    %74 = vector.extract_strided_slice %38 {offsets = [0, 48], sizes = [16, 8], strides = [1, 1]} : vector<16x96xf32> to vector<16x8xf32>
    %75 = vector.extract_strided_slice %38 {offsets = [0, 80], sizes = [16, 8], strides = [1, 1]} : vector<16x96xf32> to vector<16x8xf32>
    %76 = tpu.transpose %74, [1, 0] : vector<16x8xf32> -> vector<8x16xf32>
    %cst_24 = arith.constant dense<0.000000e+00> : vector<16x16xf32>
    %77 = tpu.matmul %73, %76, %cst_24 {dimension_numbers = #tpu.dot_dimension_numbers<[1], [0], [0], [1], [0, 0, 1, 1], [], []>} : vector<16x8xf32>, vector<8x16xf32>, vector<16x16xf32> -> vector<16x16xf32>
    %78 = arith.addf %77, %5 : vector<16x16xf32>
    %cst_25 = arith.constant dense<0xFF800000> : vector<16xf32>
    %79 = vector.multi_reduction <maximumf>, %78, %cst_25 [1] : vector<16x16xf32> to vector<16xf32>
    %80 = vector.shape_cast %79 : vector<16xf32> to vector<16x1xf32>
    %81 = vector.broadcast %80 : vector<16x1xf32> to vector<16x16xf32>
    %82 = arith.subf %78, %81 : vector<16x16xf32>
    %83 = math.exp %82 : vector<16x16xf32>
    %cst_26 = arith.constant dense<0.000000e+00> : vector<16xf32>
    %84 = vector.multi_reduction <add>, %83, %cst_26 [1] : vector<16x16xf32> to vector<16xf32>
    %85 = vector.shape_cast %84 : vector<16xf32> to vector<16x1xf32>
    %86 = tpu.reciprocal %85 {approx = true} : vector<16x1xf32> -> vector<16x1xf32>
    %87 = vector.broadcast %86 : vector<16x1xf32> to vector<16x16xf32>
    %88 = arith.mulf %83, %87 : vector<16x16xf32>
    %cst_27 = arith.constant dense<0.000000e+00> : vector<16x8xf32>
    %89 = tpu.matmul %88, %75, %cst_27 {dimension_numbers = #tpu.dot_dimension_numbers<[1], [0], [0], [1], [0, 0, 1, 1], [], []>} : vector<16x16xf32>, vector<16x8xf32>, vector<16x8xf32> -> vector<16x8xf32>
    %90 = vector.extract_strided_slice %38 {offsets = [0, 24], sizes = [16, 8], strides = [1, 1]} : vector<16x96xf32> to vector<16x8xf32>
    %91 = vector.extract_strided_slice %38 {offsets = [0, 56], sizes = [16, 8], strides = [1, 1]} : vector<16x96xf32> to vector<16x8xf32>
    %92 = vector.extract_strided_slice %38 {offsets = [0, 88], sizes = [16, 8], strides = [1, 1]} : vector<16x96xf32> to vector<16x8xf32>
    %93 = tpu.transpose %91, [1, 0] : vector<16x8xf32> -> vector<8x16xf32>
    %cst_28 = arith.constant dense<0.000000e+00> : vector<16x16xf32>
    %94 = tpu.matmul %90, %93, %cst_28 {dimension_numbers = #tpu.dot_dimension_numbers<[1], [0], [0], [1], [0, 0, 1, 1], [], []>} : vector<16x8xf32>, vector<8x16xf32>, vector<16x16xf32> -> vector<16x16xf32>
    %95 = arith.addf %94, %5 : vector<16x16xf32>
    %cst_29 = arith.constant dense<0xFF800000> : vector<16xf32>
    %96 = vector.multi_reduction <maximumf>, %95, %cst_29 [1] : vector<16x16xf32> to vector<16xf32>
    %97 = vector.shape_cast %96 : vector<16xf32> to vector<16x1xf32>
    %98 = vector.broadcast %97 : vector<16x1xf32> to vector<16x16xf32>
    %99 = arith.subf %95, %98 : vector<16x16xf32>
    %100 = math.exp %99 : vector<16x16xf32>
    %cst_30 = arith.constant dense<0.000000e+00> : vector<16xf32>
    %101 = vector.multi_reduction <add>, %100, %cst_30 [1] : vector<16x16xf32> to vector<16xf32>
    %102 = vector.shape_cast %101 : vector<16xf32> to vector<16x1xf32>
    %103 = tpu.reciprocal %102 {approx = true} : vector<16x1xf32> -> vector<16x1xf32>
    %104 = vector.broadcast %103 : vector<16x1xf32> to vector<16x16xf32>
    %105 = arith.mulf %100, %104 : vector<16x16xf32>
    %cst_31 = arith.constant dense<0.000000e+00> : vector<16x8xf32>
    %106 = tpu.matmul %105, %92, %cst_31 {dimension_numbers = #tpu.dot_dimension_numbers<[1], [0], [0], [1], [0, 0, 1, 1], [], []>} : vector<16x16xf32>, vector<16x8xf32>, vector<16x8xf32> -> vector<16x8xf32>
    %107 = tpu.concatenate %55, %72, %89, %106 in 1 : vector<16x8xf32>, vector<16x8xf32>, vector<16x8xf32>, vector<16x8xf32> -> vector<16x32xf32>
    %cst_32 = arith.constant dense<0.000000e+00> : vector<16x32xf32>
    %108 = tpu.matmul %107, %7, %cst_32 {dimension_numbers = #tpu.dot_dimension_numbers<[1], [0], [0], [1], [0, 0, 1, 1], [], []>} : vector<16x32xf32>, vector<32x32xf32>, vector<16x32xf32> -> vector<16x32xf32>
    %109 = arith.addf %4, %108 : vector<16x32xf32>
    %110 = vector.broadcast %15 : vector<1x32xf32> to vector<16x32xf32>
    %111 = arith.addf %109, %110 : vector<16x32xf32>
    %cst_33 = arith.constant dense<0.000000e+00> : vector<16xf32>
    %112 = vector.multi_reduction <add>, %111, %cst_33 [1] : vector<16x32xf32> to vector<16xf32>
    %113 = vector.shape_cast %112 : vector<16xf32> to vector<16x1xf32>
    %cst_34 = arith.constant 3.200000e+01 : f32
    %114 = vector.broadcast %cst_34 : f32 to vector<16x1xf32>
    %115 = arith.divf %113, %114 : vector<16x1xf32>
    %116 = vector.broadcast %115 : vector<16x1xf32> to vector<16x32xf32>
    %117 = arith.subf %111, %116 : vector<16x32xf32>
    %118 = arith.mulf %117, %117 : vector<16x32xf32>
    %cst_35 = arith.constant dense<0.000000e+00> : vector<16xf32>
    %119 = vector.multi_reduction <add>, %118, %cst_35 [1] : vector<16x32xf32> to vector<16xf32>
    %120 = vector.shape_cast %119 : vector<16xf32> to vector<16x1xf32>
    %cst_36 = arith.constant 3.200000e+01 : f32
    %121 = vector.broadcast %cst_36 : f32 to vector<16x1xf32>
    %122 = arith.divf %120, %121 : vector<16x1xf32>
    %cst_37 = arith.constant 9.99999974E-6 : f32
    %123 = vector.broadcast %cst_37 : f32 to vector<16x1xf32>
    %124 = arith.addf %122, %123 : vector<16x1xf32>
    %125 = math.rsqrt %124 : vector<16x1xf32>
    %126 = vector.broadcast %125 : vector<16x1xf32> to vector<16x32xf32>
    %127 = arith.mulf %117, %126 : vector<16x32xf32>
    %128 = vector.broadcast %13 : vector<1x32xf32> to vector<16x32xf32>
    %129 = arith.mulf %127, %128 : vector<16x32xf32>
    %130 = vector.broadcast %14 : vector<1x32xf32> to vector<16x32xf32>
    %131 = arith.addf %129, %130 : vector<16x32xf32>
    %cst_38 = arith.constant dense<0.000000e+00> : vector<16x128xf32>
    %132 = tpu.matmul %131, %8, %cst_38 {dimension_numbers = #tpu.dot_dimension_numbers<[1], [0], [0], [1], [0, 0, 1, 1], [], []>} : vector<16x32xf32>, vector<32x128xf32>, vector<16x128xf32> -> vector<16x128xf32>
    %133 = vector.broadcast %17 : vector<1x128xf32> to vector<16x128xf32>
    %134 = arith.addf %132, %133 : vector<16x128xf32>
    %135 = arith.mulf %134, %134 : vector<16x128xf32>
    %136 = arith.mulf %134, %135 : vector<16x128xf32>
    %cst_39 = arith.constant 4.471500e-02 : f32
    %137 = vector.broadcast %cst_39 : f32 to vector<16x128xf32>
    %138 = arith.mulf %137, %136 : vector<16x128xf32>
    %139 = arith.addf %134, %138 : vector<16x128xf32>
    %cst_40 = arith.constant 0.797884583 : f32
    %140 = vector.broadcast %cst_40 : f32 to vector<16x128xf32>
    %141 = arith.mulf %140, %139 : vector<16x128xf32>
    %142 = math.tanh %141 : vector<16x128xf32>
    %cst_41 = arith.constant 1.000000e+00 : f32
    %143 = vector.broadcast %cst_41 : f32 to vector<16x128xf32>
    %144 = arith.addf %143, %142 : vector<16x128xf32>
    %cst_42 = arith.constant 5.000000e-01 : f32
    %145 = vector.broadcast %cst_42 : f32 to vector<16x128xf32>
    %146 = arith.mulf %145, %144 : vector<16x128xf32>
    %147 = arith.mulf %134, %146 : vector<16x128xf32>
    %cst_43 = arith.constant dense<0.000000e+00> : vector<16x32xf32>
    %148 = tpu.matmul %147, %9, %cst_43 {dimension_numbers = #tpu.dot_dimension_numbers<[1], [0], [0], [1], [0, 0, 1, 1], [], []>} : vector<16x128xf32>, vector<128x32xf32>, vector<16x32xf32> -> vector<16x32xf32>
    %149 = arith.addf %111, %148 : vector<16x32xf32>
    %150 = vector.broadcast %16 : vector<1x32xf32> to vector<16x32xf32>
    %151 = arith.addf %149, %150 : vector<16x32xf32>
    %c496 = arith.constant 496 : index
    %c0_44 = arith.constant 0 : index
    %152 = vector.load %arg1[%c496, %c0_44] : memref<728x128xf32, #tpu.memory_space<vmem>>, vector<32x96xf32>
    %c528 = arith.constant 528 : index
    %c0_45 = arith.constant 0 : index
    %153 = vector.load %arg1[%c528, %c0_45] : memref<728x128xf32, #tpu.memory_space<vmem>>, vector<32x32xf32>
    %c560 = arith.constant 560 : index
    %c0_46 = arith.constant 0 : index
    %154 = vector.load %arg1[%c560, %c0_46] : memref<728x128xf32, #tpu.memory_space<vmem>>, vector<32x128xf32>
    %c592 = arith.constant 592 : index
    %c0_47 = arith.constant 0 : index
    %155 = vector.load %arg1[%c592, %c0_47] : memref<728x128xf32, #tpu.memory_space<vmem>>, vector<128x32xf32>
    %c720 = arith.constant 720 : index
    %c0_48 = arith.constant 0 : index
    %156 = vector.load %arg1[%c720, %c0_48] : memref<728x128xf32, #tpu.memory_space<vmem>>, vector<8x128xf32>
    %157 = vector.extract_strided_slice %156 {offsets = [0, 0], sizes = [1, 32], strides = [1, 1]} : vector<8x128xf32> to vector<1x32xf32>
    %158 = vector.extract_strided_slice %156 {offsets = [1, 0], sizes = [1, 32], strides = [1, 1]} : vector<8x128xf32> to vector<1x32xf32>
    %159 = vector.extract_strided_slice %156 {offsets = [2, 0], sizes = [1, 32], strides = [1, 1]} : vector<8x128xf32> to vector<1x32xf32>
    %160 = vector.extract_strided_slice %156 {offsets = [3, 0], sizes = [1, 32], strides = [1, 1]} : vector<8x128xf32> to vector<1x32xf32>
    %161 = vector.extract_strided_slice %156 {offsets = [4, 0], sizes = [1, 32], strides = [1, 1]} : vector<8x128xf32> to vector<1x32xf32>
    %162 = vector.extract_strided_slice %156 {offsets = [5, 0], sizes = [1, 32], strides = [1, 1]} : vector<8x128xf32> to vector<1x32xf32>
    %163 = vector.extract_strided_slice %156 {offsets = [6, 0], sizes = [1, 128], strides = [1, 1]} : vector<8x128xf32> to vector<1x128xf32>
    %cst_49 = arith.constant dense<0.000000e+00> : vector<16xf32>
    %164 = vector.multi_reduction <add>, %151, %cst_49 [1] : vector<16x32xf32> to vector<16xf32>
    %165 = vector.shape_cast %164 : vector<16xf32> to vector<16x1xf32>
    %cst_50 = arith.constant 3.200000e+01 : f32
    %166 = vector.broadcast %cst_50 : f32 to vector<16x1xf32>
    %167 = arith.divf %165, %166 : vector<16x1xf32>
    %168 = vector.broadcast %167 : vector<16x1xf32> to vector<16x32xf32>
    %169 = arith.subf %151, %168 : vector<16x32xf32>
    %170 = arith.mulf %169, %169 : vector<16x32xf32>
    %cst_51 = arith.constant dense<0.000000e+00> : vector<16xf32>
    %171 = vector.multi_reduction <add>, %170, %cst_51 [1] : vector<16x32xf32> to vector<16xf32>
    %172 = vector.shape_cast %171 : vector<16xf32> to vector<16x1xf32>
    %cst_52 = arith.constant 3.200000e+01 : f32
    %173 = vector.broadcast %cst_52 : f32 to vector<16x1xf32>
    %174 = arith.divf %172, %173 : vector<16x1xf32>
    %cst_53 = arith.constant 9.99999974E-6 : f32
    %175 = vector.broadcast %cst_53 : f32 to vector<16x1xf32>
    %176 = arith.addf %174, %175 : vector<16x1xf32>
    %177 = math.rsqrt %176 : vector<16x1xf32>
    %178 = vector.broadcast %177 : vector<16x1xf32> to vector<16x32xf32>
    %179 = arith.mulf %169, %178 : vector<16x32xf32>
    %180 = vector.broadcast %157 : vector<1x32xf32> to vector<16x32xf32>
    %181 = arith.mulf %179, %180 : vector<16x32xf32>
    %182 = vector.broadcast %158 : vector<1x32xf32> to vector<16x32xf32>
    %183 = arith.addf %181, %182 : vector<16x32xf32>
    %cst_54 = arith.constant dense<0.000000e+00> : vector<16x96xf32>
    %184 = tpu.matmul %183, %152, %cst_54 {dimension_numbers = #tpu.dot_dimension_numbers<[1], [0], [0], [1], [0, 0, 1, 1], [], []>} : vector<16x32xf32>, vector<32x96xf32>, vector<16x96xf32> -> vector<16x96xf32>
    %185 = vector.extract_strided_slice %184 {offsets = [0, 0], sizes = [16, 8], strides = [1, 1]} : vector<16x96xf32> to vector<16x8xf32>
    %186 = vector.extract_strided_slice %184 {offsets = [0, 32], sizes = [16, 8], strides = [1, 1]} : vector<16x96xf32> to vector<16x8xf32>
    %187 = vector.extract_strided_slice %184 {offsets = [0, 64], sizes = [16, 8], strides = [1, 1]} : vector<16x96xf32> to vector<16x8xf32>
    %188 = tpu.transpose %186, [1, 0] : vector<16x8xf32> -> vector<8x16xf32>
    %cst_55 = arith.constant dense<0.000000e+00> : vector<16x16xf32>
    %189 = tpu.matmul %185, %188, %cst_55 {dimension_numbers = #tpu.dot_dimension_numbers<[1], [0], [0], [1], [0, 0, 1, 1], [], []>} : vector<16x8xf32>, vector<8x16xf32>, vector<16x16xf32> -> vector<16x16xf32>
    %190 = arith.addf %189, %5 : vector<16x16xf32>
    %cst_56 = arith.constant dense<0xFF800000> : vector<16xf32>
    %191 = vector.multi_reduction <maximumf>, %190, %cst_56 [1] : vector<16x16xf32> to vector<16xf32>
    %192 = vector.shape_cast %191 : vector<16xf32> to vector<16x1xf32>
    %193 = vector.broadcast %192 : vector<16x1xf32> to vector<16x16xf32>
    %194 = arith.subf %190, %193 : vector<16x16xf32>
    %195 = math.exp %194 : vector<16x16xf32>
    %cst_57 = arith.constant dense<0.000000e+00> : vector<16xf32>
    %196 = vector.multi_reduction <add>, %195, %cst_57 [1] : vector<16x16xf32> to vector<16xf32>
    %197 = vector.shape_cast %196 : vector<16xf32> to vector<16x1xf32>
    %198 = tpu.reciprocal %197 {approx = true} : vector<16x1xf32> -> vector<16x1xf32>
    %199 = vector.broadcast %198 : vector<16x1xf32> to vector<16x16xf32>
    %200 = arith.mulf %195, %199 : vector<16x16xf32>
    %cst_58 = arith.constant dense<0.000000e+00> : vector<16x8xf32>
    %201 = tpu.matmul %200, %187, %cst_58 {dimension_numbers = #tpu.dot_dimension_numbers<[1], [0], [0], [1], [0, 0, 1, 1], [], []>} : vector<16x16xf32>, vector<16x8xf32>, vector<16x8xf32> -> vector<16x8xf32>
    %202 = vector.extract_strided_slice %184 {offsets = [0, 8], sizes = [16, 8], strides = [1, 1]} : vector<16x96xf32> to vector<16x8xf32>
    %203 = vector.extract_strided_slice %184 {offsets = [0, 40], sizes = [16, 8], strides = [1, 1]} : vector<16x96xf32> to vector<16x8xf32>
    %204 = vector.extract_strided_slice %184 {offsets = [0, 72], sizes = [16, 8], strides = [1, 1]} : vector<16x96xf32> to vector<16x8xf32>
    %205 = tpu.transpose %203, [1, 0] : vector<16x8xf32> -> vector<8x16xf32>
    %cst_59 = arith.constant dense<0.000000e+00> : vector<16x16xf32>
    %206 = tpu.matmul %202, %205, %cst_59 {dimension_numbers = #tpu.dot_dimension_numbers<[1], [0], [0], [1], [0, 0, 1, 1], [], []>} : vector<16x8xf32>, vector<8x16xf32>, vector<16x16xf32> -> vector<16x16xf32>
    %207 = arith.addf %206, %5 : vector<16x16xf32>
    %cst_60 = arith.constant dense<0xFF800000> : vector<16xf32>
    %208 = vector.multi_reduction <maximumf>, %207, %cst_60 [1] : vector<16x16xf32> to vector<16xf32>
    %209 = vector.shape_cast %208 : vector<16xf32> to vector<16x1xf32>
    %210 = vector.broadcast %209 : vector<16x1xf32> to vector<16x16xf32>
    %211 = arith.subf %207, %210 : vector<16x16xf32>
    %212 = math.exp %211 : vector<16x16xf32>
    %cst_61 = arith.constant dense<0.000000e+00> : vector<16xf32>
    %213 = vector.multi_reduction <add>, %212, %cst_61 [1] : vector<16x16xf32> to vector<16xf32>
    %214 = vector.shape_cast %213 : vector<16xf32> to vector<16x1xf32>
    %215 = tpu.reciprocal %214 {approx = true} : vector<16x1xf32> -> vector<16x1xf32>
    %216 = vector.broadcast %215 : vector<16x1xf32> to vector<16x16xf32>
    %217 = arith.mulf %212, %216 : vector<16x16xf32>
    %cst_62 = arith.constant dense<0.000000e+00> : vector<16x8xf32>
    %218 = tpu.matmul %217, %204, %cst_62 {dimension_numbers = #tpu.dot_dimension_numbers<[1], [0], [0], [1], [0, 0, 1, 1], [], []>} : vector<16x16xf32>, vector<16x8xf32>, vector<16x8xf32> -> vector<16x8xf32>
    %219 = vector.extract_strided_slice %184 {offsets = [0, 16], sizes = [16, 8], strides = [1, 1]} : vector<16x96xf32> to vector<16x8xf32>
    %220 = vector.extract_strided_slice %184 {offsets = [0, 48], sizes = [16, 8], strides = [1, 1]} : vector<16x96xf32> to vector<16x8xf32>
    %221 = vector.extract_strided_slice %184 {offsets = [0, 80], sizes = [16, 8], strides = [1, 1]} : vector<16x96xf32> to vector<16x8xf32>
    %222 = tpu.transpose %220, [1, 0] : vector<16x8xf32> -> vector<8x16xf32>
    %cst_63 = arith.constant dense<0.000000e+00> : vector<16x16xf32>
    %223 = tpu.matmul %219, %222, %cst_63 {dimension_numbers = #tpu.dot_dimension_numbers<[1], [0], [0], [1], [0, 0, 1, 1], [], []>} : vector<16x8xf32>, vector<8x16xf32>, vector<16x16xf32> -> vector<16x16xf32>
    %224 = arith.addf %223, %5 : vector<16x16xf32>
    %cst_64 = arith.constant dense<0xFF800000> : vector<16xf32>
    %225 = vector.multi_reduction <maximumf>, %224, %cst_64 [1] : vector<16x16xf32> to vector<16xf32>
    %226 = vector.shape_cast %225 : vector<16xf32> to vector<16x1xf32>
    %227 = vector.broadcast %226 : vector<16x1xf32> to vector<16x16xf32>
    %228 = arith.subf %224, %227 : vector<16x16xf32>
    %229 = math.exp %228 : vector<16x16xf32>
    %cst_65 = arith.constant dense<0.000000e+00> : vector<16xf32>
    %230 = vector.multi_reduction <add>, %229, %cst_65 [1] : vector<16x16xf32> to vector<16xf32>
    %231 = vector.shape_cast %230 : vector<16xf32> to vector<16x1xf32>
    %232 = tpu.reciprocal %231 {approx = true} : vector<16x1xf32> -> vector<16x1xf32>
    %233 = vector.broadcast %232 : vector<16x1xf32> to vector<16x16xf32>
    %234 = arith.mulf %229, %233 : vector<16x16xf32>
    %cst_66 = arith.constant dense<0.000000e+00> : vector<16x8xf32>
    %235 = tpu.matmul %234, %221, %cst_66 {dimension_numbers = #tpu.dot_dimension_numbers<[1], [0], [0], [1], [0, 0, 1, 1], [], []>} : vector<16x16xf32>, vector<16x8xf32>, vector<16x8xf32> -> vector<16x8xf32>
    %236 = vector.extract_strided_slice %184 {offsets = [0, 24], sizes = [16, 8], strides = [1, 1]} : vector<16x96xf32> to vector<16x8xf32>
    %237 = vector.extract_strided_slice %184 {offsets = [0, 56], sizes = [16, 8], strides = [1, 1]} : vector<16x96xf32> to vector<16x8xf32>
    %238 = vector.extract_strided_slice %184 {offsets = [0, 88], sizes = [16, 8], strides = [1, 1]} : vector<16x96xf32> to vector<16x8xf32>
    %239 = tpu.transpose %237, [1, 0] : vector<16x8xf32> -> vector<8x16xf32>
    %cst_67 = arith.constant dense<0.000000e+00> : vector<16x16xf32>
    %240 = tpu.matmul %236, %239, %cst_67 {dimension_numbers = #tpu.dot_dimension_numbers<[1], [0], [0], [1], [0, 0, 1, 1], [], []>} : vector<16x8xf32>, vector<8x16xf32>, vector<16x16xf32> -> vector<16x16xf32>
    %241 = arith.addf %240, %5 : vector<16x16xf32>
    %cst_68 = arith.constant dense<0xFF800000> : vector<16xf32>
    %242 = vector.multi_reduction <maximumf>, %241, %cst_68 [1] : vector<16x16xf32> to vector<16xf32>
    %243 = vector.shape_cast %242 : vector<16xf32> to vector<16x1xf32>
    %244 = vector.broadcast %243 : vector<16x1xf32> to vector<16x16xf32>
    %245 = arith.subf %241, %244 : vector<16x16xf32>
    %246 = math.exp %245 : vector<16x16xf32>
    %cst_69 = arith.constant dense<0.000000e+00> : vector<16xf32>
    %247 = vector.multi_reduction <add>, %246, %cst_69 [1] : vector<16x16xf32> to vector<16xf32>
    %248 = vector.shape_cast %247 : vector<16xf32> to vector<16x1xf32>
    %249 = tpu.reciprocal %248 {approx = true} : vector<16x1xf32> -> vector<16x1xf32>
    %250 = vector.broadcast %249 : vector<16x1xf32> to vector<16x16xf32>
    %251 = arith.mulf %246, %250 : vector<16x16xf32>
    %cst_70 = arith.constant dense<0.000000e+00> : vector<16x8xf32>
    %252 = tpu.matmul %251, %238, %cst_70 {dimension_numbers = #tpu.dot_dimension_numbers<[1], [0], [0], [1], [0, 0, 1, 1], [], []>} : vector<16x16xf32>, vector<16x8xf32>, vector<16x8xf32> -> vector<16x8xf32>
    %253 = tpu.concatenate %201, %218, %235, %252 in 1 : vector<16x8xf32>, vector<16x8xf32>, vector<16x8xf32>, vector<16x8xf32> -> vector<16x32xf32>
    %cst_71 = arith.constant dense<0.000000e+00> : vector<16x32xf32>
    %254 = tpu.matmul %253, %153, %cst_71 {dimension_numbers = #tpu.dot_dimension_numbers<[1], [0], [0], [1], [0, 0, 1, 1], [], []>} : vector<16x32xf32>, vector<32x32xf32>, vector<16x32xf32> -> vector<16x32xf32>
    %255 = arith.addf %151, %254 : vector<16x32xf32>
    %256 = vector.broadcast %161 : vector<1x32xf32> to vector<16x32xf32>
    %257 = arith.addf %255, %256 : vector<16x32xf32>
    %cst_72 = arith.constant dense<0.000000e+00> : vector<16xf32>
    %258 = vector.multi_reduction <add>, %257, %cst_72 [1] : vector<16x32xf32> to vector<16xf32>
    %259 = vector.shape_cast %258 : vector<16xf32> to vector<16x1xf32>
    %cst_73 = arith.constant 3.200000e+01 : f32
    %260 = vector.broadcast %cst_73 : f32 to vector<16x1xf32>
    %261 = arith.divf %259, %260 : vector<16x1xf32>
    %262 = vector.broadcast %261 : vector<16x1xf32> to vector<16x32xf32>
    %263 = arith.subf %257, %262 : vector<16x32xf32>
    %264 = arith.mulf %263, %263 : vector<16x32xf32>
    %cst_74 = arith.constant dense<0.000000e+00> : vector<16xf32>
    %265 = vector.multi_reduction <add>, %264, %cst_74 [1] : vector<16x32xf32> to vector<16xf32>
    %266 = vector.shape_cast %265 : vector<16xf32> to vector<16x1xf32>
    %cst_75 = arith.constant 3.200000e+01 : f32
    %267 = vector.broadcast %cst_75 : f32 to vector<16x1xf32>
    %268 = arith.divf %266, %267 : vector<16x1xf32>
    %cst_76 = arith.constant 9.99999974E-6 : f32
    %269 = vector.broadcast %cst_76 : f32 to vector<16x1xf32>
    %270 = arith.addf %268, %269 : vector<16x1xf32>
    %271 = math.rsqrt %270 : vector<16x1xf32>
    %272 = vector.broadcast %271 : vector<16x1xf32> to vector<16x32xf32>
    %273 = arith.mulf %263, %272 : vector<16x32xf32>
    %274 = vector.broadcast %159 : vector<1x32xf32> to vector<16x32xf32>
    %275 = arith.mulf %273, %274 : vector<16x32xf32>
    %276 = vector.broadcast %160 : vector<1x32xf32> to vector<16x32xf32>
    %277 = arith.addf %275, %276 : vector<16x32xf32>
    %cst_77 = arith.constant dense<0.000000e+00> : vector<16x128xf32>
    %278 = tpu.matmul %277, %154, %cst_77 {dimension_numbers = #tpu.dot_dimension_numbers<[1], [0], [0], [1], [0, 0, 1, 1], [], []>} : vector<16x32xf32>, vector<32x128xf32>, vector<16x128xf32> -> vector<16x128xf32>
    %279 = vector.broadcast %163 : vector<1x128xf32> to vector<16x128xf32>
    %280 = arith.addf %278, %279 : vector<16x128xf32>
    %281 = arith.mulf %280, %280 : vector<16x128xf32>
    %282 = arith.mulf %280, %281 : vector<16x128xf32>
    %cst_78 = arith.constant 4.471500e-02 : f32
    %283 = vector.broadcast %cst_78 : f32 to vector<16x128xf32>
    %284 = arith.mulf %283, %282 : vector<16x128xf32>
    %285 = arith.addf %280, %284 : vector<16x128xf32>
    %cst_79 = arith.constant 0.797884583 : f32
    %286 = vector.broadcast %cst_79 : f32 to vector<16x128xf32>
    %287 = arith.mulf %286, %285 : vector<16x128xf32>
    %288 = math.tanh %287 : vector<16x128xf32>
    %cst_80 = arith.constant 1.000000e+00 : f32
    %289 = vector.broadcast %cst_80 : f32 to vector<16x128xf32>
    %290 = arith.addf %289, %288 : vector<16x128xf32>
    %cst_81 = arith.constant 5.000000e-01 : f32
    %291 = vector.broadcast %cst_81 : f32 to vector<16x128xf32>
    %292 = arith.mulf %291, %290 : vector<16x128xf32>
    %293 = arith.mulf %280, %292 : vector<16x128xf32>
    %cst_82 = arith.constant dense<0.000000e+00> : vector<16x32xf32>
    %294 = tpu.matmul %293, %155, %cst_82 {dimension_numbers = #tpu.dot_dimension_numbers<[1], [0], [0], [1], [0, 0, 1, 1], [], []>} : vector<16x128xf32>, vector<128x32xf32>, vector<16x32xf32> -> vector<16x32xf32>
    %295 = arith.addf %257, %294 : vector<16x32xf32>
    %296 = vector.broadcast %162 : vector<1x32xf32> to vector<16x32xf32>
    %297 = arith.addf %295, %296 : vector<16x32xf32>
    %c256 = arith.constant 256 : index
    %c0_83 = arith.constant 0 : index
    %298 = vector.load %arg1[%c256, %c0_83] : memref<728x128xf32, #tpu.memory_space<vmem>>, vector<1x32xf32>
    %c257 = arith.constant 257 : index
    %c0_84 = arith.constant 0 : index
    %299 = vector.load %arg1[%c257, %c0_84] : memref<728x128xf32, #tpu.memory_space<vmem>>, vector<1x32xf32>
    %c258 = arith.constant 258 : index
    %c0_85 = arith.constant 0 : index
    %300 = vector.load %arg1[%c258, %c0_85] : memref<728x128xf32, #tpu.memory_space<vmem>>, vector<1x128xf32>
    %c224 = arith.constant 224 : index
    %c0_86 = arith.constant 0 : index
    %301 = vector.load %arg1[%c224, %c0_86] : memref<728x128xf32, #tpu.memory_space<vmem>>, vector<32x128xf32>
    %cst_87 = arith.constant dense<0.000000e+00> : vector<16xf32>
    %302 = vector.multi_reduction <add>, %297, %cst_87 [1] : vector<16x32xf32> to vector<16xf32>
    %303 = vector.shape_cast %302 : vector<16xf32> to vector<16x1xf32>
    %cst_88 = arith.constant 3.200000e+01 : f32
    %304 = vector.broadcast %cst_88 : f32 to vector<16x1xf32>
    %305 = arith.divf %303, %304 : vector<16x1xf32>
    %306 = vector.broadcast %305 : vector<16x1xf32> to vector<16x32xf32>
    %307 = arith.subf %297, %306 : vector<16x32xf32>
    %308 = arith.mulf %307, %307 : vector<16x32xf32>
    %cst_89 = arith.constant dense<0.000000e+00> : vector<16xf32>
    %309 = vector.multi_reduction <add>, %308, %cst_89 [1] : vector<16x32xf32> to vector<16xf32>
    %310 = vector.shape_cast %309 : vector<16xf32> to vector<16x1xf32>
    %cst_90 = arith.constant 3.200000e+01 : f32
    %311 = vector.broadcast %cst_90 : f32 to vector<16x1xf32>
    %312 = arith.divf %310, %311 : vector<16x1xf32>
    %cst_91 = arith.constant 9.99999974E-6 : f32
    %313 = vector.broadcast %cst_91 : f32 to vector<16x1xf32>
    %314 = arith.addf %312, %313 : vector<16x1xf32>
    %315 = math.rsqrt %314 : vector<16x1xf32>
    %316 = vector.broadcast %315 : vector<16x1xf32> to vector<16x32xf32>
    %317 = arith.mulf %307, %316 : vector<16x32xf32>
    %318 = vector.broadcast %298 : vector<1x32xf32> to vector<16x32xf32>
    %319 = arith.mulf %317, %318 : vector<16x32xf32>
    %320 = vector.broadcast %299 : vector<1x32xf32> to vector<16x32xf32>
    %321 = arith.addf %319, %320 : vector<16x32xf32>
    %cst_92 = arith.constant dense<0.000000e+00> : vector<16x128xf32>
    %322 = tpu.matmul %321, %301, %cst_92 {dimension_numbers = #tpu.dot_dimension_numbers<[1], [0], [0], [1], [0, 0, 1, 1], [], []>} : vector<16x32xf32>, vector<32x128xf32>, vector<16x128xf32> -> vector<16x128xf32>
    %323 = vector.broadcast %300 : vector<1x128xf32> to vector<16x128xf32>
    %324 = arith.addf %322, %323 : vector<16x128xf32>
    %c0_93 = arith.constant 0 : index
    %c0_94 = arith.constant 0 : index
    %325 = vector.load %arg2[%c0_93, %c0_94] : memref<16x128xf32, #tpu.memory_space<vmem>>, vector<16x128xf32>
    tpu.vector_store %arg2[%c0_93, %c0_94], %324 {strides = array<i32>} : memref<16x128xf32, #tpu.memory_space<vmem>>, vector<16x128xf32>,
    return
  }
}

</mosaic_0001>

<bundles_post_ra>
// kernel: vit_forward.1
= control target key start
LH: loop header
LB: loop body
LE: loop exit
PB: predicated region body
PF: predicated region fallthrough
CT: control target
= control target key end

     0   :  { %v3421_v0 = vmov 0.0   ;;  %vm41_vm0 = vcmask 523264   ;;  %vm154_vm1 = vcmask 261120   ;;  %v182_v58 = vlaneseq  ;;  %s3422_s22 = smov 96   ;;  %s3423_s23 = smov 120   ;;  %s4175_s1 = inlined_call_operand.vmem [shape: f32[728,128], index: 1, kind: input, shape index: {}]   ;;  %s4176_s0 = inlined_call_operand.vmem [shape: f32[16,192], index: 0, kind: input, shape index: {}]   ;;  %s4177_s2 = inlined_call_operand.vmem [shape: f32[16,128], index: 2, kind: output, shape index: {}]  }
   0x1   :  { %48 = vmatprep.subr.mxu0 %v3421_v0  ;;  %v26_v1 = vld [vmem:[%s4175_s1 + $0x98] sm:$0xff]  ;;  %v25_v2 = vld [vmem:[%s4175_s1 + $0x90] sm:$0xff]  ;;  %v24_v3 = vld [vmem:[%s4175_s1 + $0x88] sm:$0xff]  ;;  %vm281_vm2 = vcmask 64512   ;;  %s3424_s24 = smov 88   ;;  %vm365_vm3 = vcmask 130048  }
   0x2   :  { %49 = vmatpush1.msra.mxu0 %v26_v1  ;;  %v23_v4 = vld [vmem:[%s4175_s1 + $0x80] sm:$0xff]  ;;  %v22_v5 = vld [vmem:[%s4175_s1 + $0x78] sm:$0xff]  ;;  %v21_v6 = vld [vmem:[%s4175_s1 + $0x70] sm:$0xff]  ;;  %v3591_v60 = vshrl.u32 %v182_v58, 7  ;;  %s3425_s29 = smov 56   ;;  %s3426_s30 = smov 80  }
   0x3   :  { %50 = vmatprep.subr.mxu0 %v3421_v0  ;;  %v38_v7 = vld [vmem:[%s4176_s0 + $0x8] sm:$0xff]  ;;  %v19_v9 = vld [vmem:[%s4175_s1 + $0x60] sm:$0xff]  ;;  %v18_v10 = vld [vmem:[%s4175_s1 + $0x58] sm:$0xff]  ;;  %s3427_s3 = smov 112   ;;  %s3428_s4 = smov 48   ;;  %vm1103_vm4 = vcmask 195584  }
   0x4   :  { %51 = vmatpush1.msra.mxu0 %v25_v2  ;;  %2844 = vmatprep.mubr.msk.f32.mxu0 %vm41_vm0, %v38_v7  ;;  %v20_v8 = vld [vmem:[%s4175_s1 + $0x68] sm:$0xff]  ;;  %v17_v11 = vld [vmem:[%s4175_s1 + $0x50] sm:$0xff]  ;;  %v15_v13 = vld [vmem:[%s4175_s1 + $0x40] sm:$0xff]  ;;  %v184_v61 = vsub.s32 0, %v3591_v60  ;;  %v190_v63 = vsub.s32 1, %v3591_v60  ;;  %s3429_s5 = smov 72  }
   0x5   :  { %52 = vmatprep.subr.mxu0 %v3421_v0  ;;  %v16_v12 = vld [vmem:[%s4175_s1 + $0x48] sm:$0xff]  ;;  %v14_v14 = vld [vmem:[%s4175_s1 + $0x38] sm:$0xff]  ;;  %v13_v15 = vld [vmem:[%s4175_s1 + $0x30] sm:$0xff]  ;;  %s3430_s6 = smov 104   ;;  %s3431_s7 = smov 64  }
   0x6   :  { %53 = vmatpush1.msra.mxu0 %v24_v3  ;;  %v12_v16 = vld [vmem:[%s4175_s1 + $0x28] sm:$0xff]  ;;  %v11_v17 = vld [vmem:[%s4175_s1 + $0x20] sm:$0xff]  ;;  %v34_v18 = vld [vmem:[%s4175_s1 + $0xd8] sm:$0xff]  ;;  %s3432_s8 = smov 40   ;;  %s3433_s9 = smov 8  }
   0x7   :  { %54 = vmatprep.subr.mxu0 %v3421_v0  ;;  %v33_v19 = vld [vmem:[%s4175_s1 + $0xd0] sm:$0xff]  ;;  %v32_v20 = vld [vmem:[%s4175_s1 + $0xc8] sm:$0xff]  ;;  %v31_v21 = vld [vmem:[%s4175_s1 + $0xc0] sm:$0xff]  ;;  %s3434_s10 = smov 16   ;;  %s3435_s18 = smov 24  }
   0x8   :  { %55 = vmatpush1.msra.mxu0 %v23_v4  ;;  %v30_v22 = vld [vmem:[%s4175_s1 + $0xb8] sm:$0xff]  ;;  %v29_v23 = vld [vmem:[%s4175_s1 + $0xb0] sm:$0xff]  ;;  %v28_v24 = vld [vmem:[%s4175_s1 + $0xa8] sm:$0xff] }
   0x9   :  { %56 = vmatprep.subr.mxu0 %v3421_v0  ;;  %v27_v25 = vld [vmem:[%s4175_s1 + $0xa0] sm:$0xff]  ;;  %v40_v27 = vld [vmem:[%s4176_s0 + $0x18] sm:$0xff]  ;;  %v39_v28 = vld [vmem:[%s4176_s0 + $0x10] sm:$0xff] }
   0xa   :  { %57 = vmatpush1.msra.mxu0 %v22_v5  ;;  %v37_v26 = vld [vmem:[%s4176_s0] sm:$0xff]  ;;  %v36_v33 = vld [vmem:[%s4175_s1 + $0x8] sm:$0xff]  ;;  %v127_v50 = vld [vmem:[%s4175_s1 + $0x118] sm:$0xff] }
   0xb   :  { %58 = vmatprep.subr.mxu0 %v3421_v0  ;;  %v35_v29 = vld [vmem:[%s4175_s1] sm:$0xff]  ;;  %v126_v51 = vld [vmem:[%s4175_s1 + $0x110] sm:$0xff]  ;;  %v125_v52 = vld [vmem:[%s4175_s1 + $0x108] sm:$0xff] }
   0xc   :  { %59 = vmatpush1.msra.mxu0 %v21_v6  ;;  %v128_v49 = vld [vmem:[%s4175_s1 + $0x120] sm:$0xff]  ;;  %v3597_v62 = vld [vmem:[%s4175_s1 + $0x1e8] sm:$0xff] }
   0xd   :  { %60 = vmatprep.subr.mxu0 %v3421_v0  ;;  %v191_v3 = vrot.slane %v3597_v62, %v190_v63 }
   0xe   :  { %61 = vmatpush1.msra.mxu0 %v20_v8 }
   0xf   :  { %62 = vmatprep.subr.mxu0 %v3421_v0 }
  0x10   :  { %63 = vmatpush1.msra.mxu0 %v19_v9 }
  0x11   :  { %64 = vmatprep.subr.mxu0 %v3421_v0 }
  0x12   :  { %65 = vmatpush1.msra.mxu0 %v18_v10 }
  0x13   :  { %66 = vmatprep.subr.mxu0 %v3421_v0 }
  0x14   :  { %67 = vmatpush1.msra.mxu0 %v17_v11 }
  0x15   :  { %68 = vmatprep.subr.mxu0 %v3421_v0 }
  0x16   :  { %69 = vmatpush1.msra.mxu0 %v16_v12 }
  0x17   :  { %70 = vmatprep.subr.mxu0 %v3421_v0 }
  0x18   :  { %71 = vmatpush1.msra.mxu0 %v15_v13 }
  0x19   :  { %72 = vmatprep.subr.mxu0 %v3421_v0 }
  0x1a   :  { %73 = vmatpush1.msra.mxu0 %v14_v14 }
  0x1b   :  { %74 = vmatprep.subr.mxu0 %v3421_v0 }
  0x1c   :  { %75 = vmatpush1.msra.mxu0 %v13_v15 }
  0x1d   :  { %76 = vmatprep.subr.mxu0 %v3421_v0 }
  0x1e   :  { %77 = vmatpush1.msra.mxu0 %v12_v16 }
  0x1f   :  { %78 = vmatprep.subr.mxu0 %v3421_v0 }
  0x20   :  { %79 = vmatpush1.msra.mxu0 %v11_v17 }
  0x21   :  { %96 = vmatprep.subr.mxu0 %v3421_v0 }
  0x22   :  { %97 = vmatpush2.msra.mxu0 %v34_v18 }
  0x23   :  { %98 = vmatprep.subr.mxu0 %v3421_v0 }
  0x24   :  { %99 = vmatpush2.msra.mxu0 %v33_v19 }
  0x25   :  { %100 = vmatprep.subr.mxu0 %v3421_v0 }
  0x26   :  { %101 = vmatpush2.msra.mxu0 %v32_v20  ;;  %v3645_v20 = vld [vmem:[%s4175_s1 + $0x18] sm:$0xff] }
  0x27   :  { %102 = vmatprep.subr.mxu0 %v3421_v0 }
  0x28   :  { %103 = vmatpush2.msra.mxu0 %v31_v21 }
  0x29   :  { %104 = vmatprep.subr.mxu0 %v3421_v0 }
  0x2a   :  { %105 = vmatpush2.msra.mxu0 %v30_v22 }
  0x2b   :  { %106 = vmatprep.subr.mxu0 %v3421_v0 }
  0x2c   :  { %107 = vmatpush2.msra.mxu0 %v29_v23  ;;  %v3651_v23 = vld [vmem:[%s4175_s1 + $0x10] sm:$0xff] }
  0x2d   :  { %108 = vmatprep.subr.mxu0 %v3421_v0 }
  0x2e   :  { %109 = vmatpush2.msra.mxu0 %v28_v24 }
  0x2f   :  { %110 = vmatprep.subr.mxu0 %v3421_v0  ;;  %v185_v0 = vrot.slane %v3597_v62, %v184_v61 }
  0x30   :  { %111 = vmatpush2.msra.mxu0 %v27_v25 }
  0x31   :  { %113 = vmatmul.mubr.f32.vlgmr.msra.gmra.mxu0 %v37_v26  ;;  %3053 = vmatprep.subr.mxu0 %v128_v49 }
  0x32   :  { %2845 = vmatprep.mubr.msk.f32.mxu0 %vm41_vm0, %v40_v27  ;;  %3054 = vmatpush3.msra.mxu0 %v128_v49 }
  0x33   :  { %3055 = vmatprep.subr.mxu0 %v127_v50 }
  0x34   :  { %3056 = vmatpush3.msra.mxu0 %v127_v50 }
  0x35   :  { %118 = vmatmul.mubr.f32.gmra.mxu0 %v39_v28  ;;  %3057 = vmatprep.subr.mxu0 %v126_v51 }
  0x36   :  { %3058 = vmatpush3.msra.mxu0 %v126_v51 }
  0x37   :  { %3059 = vmatprep.subr.mxu0 %v125_v52 }
  0x38   :  { %3060 = vmatpush3.msra.mxu0 %v125_v52 }
  0xf1   :  { %v114_v30 = vpop.f32.mrf.mxu0 }
  0xf2   :  { %v3564_v31 = vadd.f32 %v114_v30, %v35_v29 }
  0xf3   :  { %v116_v32 = vpop.f32.mrf.mxu0 }
  0xf4   :  { %v155_v34 = vsel %vm154_vm1, %v3564_v31, 0.0 }
  0xf5   :  { %v119_v35 = vpop.f32.mrf.mxu0  ;;  %156 = vadd.xlane.f32.xlu0 %v155_v34 }
  0xf6   :  { %v3571_v36 = vadd.f32 %v119_v35, %v36_v33 }
  0xf7   :  { %v121_v37 = vpop.f32.mrf.mxu0 }
  0xf8   :  { %v158_v38 = vsel %vm154_vm1, %v3571_v36, 0.0 }
  0xf9   :  { %159 = vadd.xlane.f32.xlu0 %v158_v38 }
 0x17e   :  { %v157_v39 = vpop.xlane.xlu0 %156 }
 0x17f   :  { %v162_v40 = vmul.f32 0.03125, %v157_v39 }
 0x181   :  { %v164_v41 = vsub.f32 %v3564_v31, %v162_v40 }
 0x182   :  { %v160_v42 = vpop.xlane.xlu0 %159 }
 0x183   :  { %v163_v43 = vmul.f32 0.03125, %v160_v42  ;;  %v166_v44 = vmul.f32 %v164_v41, %v164_v41 }
 0x185   :  { %v165_v45 = vsub.f32 %v3571_v36, %v163_v43  ;;  %v168_v46 = vsel %vm154_vm1, %v166_v44, 0.0 }
 0x186   :  { %169 = vadd.xlane.f32.xlu1 %v168_v46 }
 0x187   :  { %v167_v47 = vmul.f32 %v165_v45, %v165_v45 }
 0x189   :  { %v171_v48 = vsel %vm154_vm1, %v167_v47, 0.0 }
 0x18a   :  { %172 = vadd.xlane.f32.xlu1 %v171_v48 }
 0x20f   :  { %v170_v53 = vpop.xlane.xlu1 %169 }
 0x210   :  { %v174_v54 = vmul.f32 0.03125, %v170_v53 }
 0x212   :  { %v176_v55 = vadd.f32 1e-05, %v174_v54 }
 0x213   :  { %v173_v56 = vpop.xlane.xlu1 %172 }
 0x214   :  { %3327 = vrsqrt.f32 %v176_v55  ;;  %v175_v57 = vmul.f32 0.03125, %v173_v56 }
 0x216   :  { %v177_v59 = vadd.f32 1e-05, %v175_v57 }
 0x218   :  { %3329 = vrsqrt.f32 %v177_v59 }
 0x221   :  { %v3328_v1 = vpop.eup %3327 }
 0x222   :  { %v180_v2 = vmul.f32 %v3328_v1, %v164_v41 }
 0x224   :  { %v186_v4 = vmul.f32 %v185_v0, %v180_v2 }
 0x225   :  { %v3330_v5 = vpop.eup %3329 }
 0x226   :  { %v181_v6 = vmul.f32 %v3330_v5, %v165_v45  ;;  %v192_v7 = vadd.f32 %v191_v3, %v186_v4 }
 0x228   :  { %v187_v8 = vmul.f32 %v185_v0, %v181_v6  ;;  %3061 = vmatprep.mubr.msk.f32.mxu0 %vm154_vm1, %v192_v7 }
 0x22a   :  { %v193_v9 = vadd.f32 %v191_v3, %v187_v8 }
 0x22c   :  { %3062 = vmatmul.mubr.msk.f32.vlgmr.msra.gmra.mxu0 %vm154_vm1, %v193_v9 }
 0x2ec   :  { %v3608_v10 = vpop.f32.mrf.mxu0 }
 0x2ed   :  { %279 = vrot.lane.b32.xlu0 %v3608_v10, %s3422_s22 }
 0x2ee   :  { %v3612_v11 = vpop.f32.mrf.mxu0 }
 0x2ef   :  { %277 = vrot.lane.b32.xlu1 %v3612_v11, %s3422_s22  ;;  %3068 = vmatprep.mubr.msk.f32.mxu1 %vm281_vm2, %v3612_v11 }
 0x2f1   :  { %475 = vrot.lane.b32.xlu0 %v3612_v11, %s3423_s23 }
 0x2f3   :  { %481 = vrot.lane.b32.xlu1 %v3608_v10, %s3424_s24 }
 0x2f7   :  { %479 = vrot.lane.b32.xlu1 %v3612_v11, %s3424_s24 }
 0x2fb   :  { %477 = vrot.lane.b32.xlu1 %v3608_v10, %s3423_s23 }
 0x35f   :  { %v280_v12 = vpop.permute.xlu0 %279 }
 0x360   :  { %3064 = vmatprep.subr.msk.mxu1 %vm281_vm2, %v280_v12 }
 0x361   :  { %3065 = vmatpush3.xpose.msk.msra.mxu1 %vm281_vm2, %v280_v12  ;;  %v278_v13 = vpop.permute.xlu1 %277 }
 0x362   :  { %3066 = vmatprep.subr.msk.mxu1 %vm281_vm2, %v278_v13 }
 0x363   :  { %v476_v15 = vpop.permute.xlu0 %475 }
 0x365   :  { %3067 = vmatpush3.xpose.msk.msra.mxu1 %vm281_vm2, %v278_v13  ;;  %v482_v14 = vpop.permute.xlu1 %481 }
 0x366   :  { %3078 = vmatprep.subr.msk.mxu1 %vm281_vm2, %v482_v14 }
 0x368   :  { %3069 = vmatmul.mubr.msk.f32.vlgmr.msra.gmra.mxu1 %vm281_vm2, %v3608_v10 }
 0x369   :  { %v480_v16 = vpop.permute.xlu1 %479  ;;  %3079 = vmatpush3.xpose.msk.msra.mxu1 %vm281_vm2, %v482_v14  ;;  %3082 = vmatprep.mubr.msk.f32.mxu1 %vm281_vm2, %v476_v15 }
 0x36a   :  { %3080 = vmatprep.subr.msk.mxu1 %vm281_vm2, %v480_v16 }
 0x36d   :  { %3081 = vmatpush3.xpose.msk.msra.mxu1 %vm281_vm2, %v480_v16  ;;  %v478_v17 = vpop.permute.xlu1 %477 }
 0x370   :  { %3083 = vmatmul.mubr.msk.f32.vlgmr.msra.gmra.mxu1 %vm281_vm2, %v478_v17 }
 0x428   :  { %v3638_v18 = vpop.f32.mrf.mxu1 }
 0x429   :  { %v362_v0 = vadd.f32 %v3638_v18, %v3645_v20 }
 0x42a   :  { %v3640_v19 = vpop.f32.mrf.mxu1 }
 0x42b   :  { %v369_v1 = vsel %vm365_vm3, %v362_v0, -inf }
 0x430   :  { %v3084_v21 = vpop.f32.mrf.mxu1 }
 0x431   :  { %v563_v22 = vadd.f32 %v3084_v21, %v3645_v20 }
 0x432   :  { %v557_v24 = vpop.f32.mrf.mxu1 }
 0x433   :  { %v558_v25 = vadd.f32 %v557_v24, %v3651_v23  ;;  %v569_v26 = vsel %vm365_vm3, %v563_v22, -inf  ;;  %v357_v24 = vadd.f32 %v3640_v19, %v3651_v23 }
 0x434   :  { %570 = vmax.xlane.f32.xlu1 %v569_v26 }
 0x435   :  { %v566_v27 = vsel %vm365_vm3, %v558_v25, -inf }
 0x436   :  { %567 = vmax.xlane.f32.xlu0 %v566_v27 }
 0x445   :  { %588 = vrot.lane.b32.xlu1 %v3612_v11, %s3425_s29 }
 0x449   :  { %681 = vrot.lane.b32.xlu1 %v3608_v10, %s3426_s30 }
 0x44d   :  { %679 = vrot.lane.b32.xlu1 %v3612_v11, %s3426_s30 }
 0x451   :  { %677 = vrot.lane.b32.xlu1 %v3608_v10, %s3427_s3 }
 0x4bd   :  { %v571_v28 = vpop.xlane.xlu1 %570 }
 0x4be   :  { %v573_v29 = vsub.f32 %v563_v22, %v571_v28 }
 0x4bf   :  { %v568_v30 = vpop.xlane.xlu0 %567 }
 0x4c0   :  { %v576_v32 = vmul.f32 1.442695, %v573_v29  ;;  %v572_v33 = vsub.f32 %v558_v25, %v568_v30  ;;  %v366_v25 = vsel %vm365_vm3, %v357_v24, -inf }
 0x4c1   :  { %v589_v42 = vpop.permute.xlu1 %588 }
 0x4c2   :  { %3331 = vpow2.f32 %v576_v32  ;;  %v574_v34 = vmul.f32 1.442695, %v572_v33 }
 0x4c4   :  { %3333 = vpow2.f32 %v574_v34 }
 0x4c5   :  { %v682_v44 = vpop.permute.xlu1 %681 }
 0x4c9   :  { %v680_v50 = vpop.permute.xlu1 %679 }
 0x4cd   :  { %v678_v51 = vpop.permute.xlu1 %677 }
 0x4cf   :  { %v3332_v35 = vpop.eup %3331 }
 0x4d0   :  { %v581_v37 = vsel %vm365_vm3, %v3332_v35, 0.0 }
 0x4d1   :  { %v3334_v38 = vpop.eup %3333  ;;  %582 = vadd.xlane.f32.xlu0 %v581_v37 }
 0x4d2   :  { %v578_v39 = vsel %vm365_vm3, %v3334_v38, 0.0 }
 0x4d5   :  { %579 = vadd.xlane.f32.xlu0 %v578_v39 }
 0x4eb   :  { %590 = vrot.lane.b32.xlu0 %v3608_v10, %s3425_s29 }
 0x4ef   :  { %675 = vrot.lane.b32.xlu0 %v3612_v11, %s3427_s3 }
 0x55a   :  { %v583_v40 = vpop.xlane.xlu0 %582 }
 0x55b   :  { %3335 = vrcp.f32 %v583_v40 }
 0x55e   :  { %v580_v41 = vpop.xlane.xlu0 %579 }
 0x55f   :  { %3337 = vrcp.f32 %v580_v41 }
 0x562   :  { %v591_v43 = vpop.permute.xlu0 %590 }
 0x563   :  { %3085 = vmatprep.subr.mxu1 %v591_v43 }
 0x564   :  { %3086 = vmatpush3.msra.mxu1 %v591_v43 }
 0x565   :  { %3087 = vmatprep.subr.mxu1 %v589_v42 }
 0x566   :  { %3088 = vmatpush3.msra.mxu1 %v589_v42  ;;  %v676_v49 = vpop.permute.xlu0 %675 }
 0x567   :  { %3092 = vmatprep.subr.msk.mxu1 %vm281_vm2, %v682_v44 }
 0x568   :  { %v3336_v45 = vpop.eup %3335 }
 0x569   :  { %v587_v48 = vmul.f32 %v3336_v45, %v3332_v35 }
 0x56c   :  { %v3338_v46 = vpop.eup %3337 }
 0x56d   :  { %v586_v47 = vmul.f32 %v3338_v46, %v3334_v38 }
 0x56f   :  { %3089 = vmatprep.mubr.msk.f32.mxu1 %vm365_vm3, %v586_v47 }
 0x570   :  { %3090 = vmatmul.mubr.msk.f32.vlgmr.msra.gmra.mxu1 %vm365_vm3, %v587_v48 }
 0x571   :  { %3093 = vmatpush3.xpose.msk.msra.mxu1 %vm281_vm2, %v682_v44  ;;  %3096 = vmatprep.mubr.msk.f32.mxu1 %vm281_vm2, %v676_v49 }
 0x572   :  { %3094 = vmatprep.subr.msk.mxu1 %vm281_vm2, %v680_v50 }
 0x575   :  { %3095 = vmatpush3.xpose.msk.msra.mxu1 %vm281_vm2, %v680_v50 }
 0x578   :  { %3097 = vmatmul.mubr.msk.f32.vlgmr.msra.gmra.mxu1 %vm281_vm2, %v678_v51 }
 0x630   :  { %v3678_v52 = vpop.f32.mrf.mxu1 }
 0x632   :  { %v3680_v53 = vpop.f32.mrf.mxu1 }
 0x638   :  { %v3098_v54 = vpop.f32.mrf.mxu1 }
 0x639   :  { %v763_v55 = vadd.f32 %v3098_v54, %v3645_v20 }
 0x63a   :  { %v757_v56 = vpop.f32.mrf.mxu1 }
 0x63b   :  { %v758_v57 = vadd.f32 %v757_v56, %v3651_v23  ;;  %v769_v58 = vsel %vm365_vm3, %v763_v55, -inf }
 0x63c   :  { %770 = vmax.xlane.f32.xlu1 %v769_v58 }
 0x63d   :  { %v766_v59 = vsel %vm365_vm3, %v758_v57, -inf }
 0x63e   :  { %767 = vmax.xlane.f32.xlu0 %v766_v59 }
 0x64d   :  { %788 = vrot.lane.b32.xlu1 %v3612_v11, %s3428_s4 }
 0x651   :  { %881 = vrot.lane.b32.xlu1 %v3608_v10, %s3429_s5 }
 0x655   :  { %879 = vrot.lane.b32.xlu1 %v3612_v11, %s3429_s5 }
 0x659   :  { %877 = vrot.lane.b32.xlu1 %v3608_v10, %s3430_s6 }
 0x67d   :  { %370 = vmax.xlane.f32.xlu1 %v369_v1 }
 0x6c5   :  { %v771_v2 = vpop.xlane.xlu1 %770 }
 0x6c6   :  { %v773_v3 = vsub.f32 %v763_v55, %v771_v2 }
 0x6c7   :  { %v768_v4 = vpop.xlane.xlu0 %767 }
 0x6c8   :  { %v776_v5 = vmul.f32 1.442695, %v773_v3  ;;  %v772_v6 = vsub.f32 %v758_v57, %v768_v4 }
 0x6c9   :  { %v789_v14 = vpop.permute.xlu1 %788 }
 0x6ca   :  { %3339 = vpow2.f32 %v776_v5  ;;  %v774_v7 = vmul.f32 1.442695, %v772_v6 }
 0x6cc   :  { %3341 = vpow2.f32 %v774_v7 }
 0x6cd   :  { %v882_v15 = vpop.permute.xlu1 %881 }
 0x6d1   :  { %v880_v16 = vpop.permute.xlu1 %879 }
 0x6d5   :  { %v878_v17 = vpop.permute.xlu1 %877 }
 0x6d7   :  { %v3340_v8 = vpop.eup %3339 }
 0x6d8   :  { %v781_v9 = vsel %vm365_vm3, %v3340_v8, 0.0 }
 0x6d9   :  { %v3342_v12 = vpop.eup %3341  ;;  %782 = vadd.xlane.f32.xlu0 %v781_v9 }
 0x6da   :  { %v778_v13 = vsel %vm365_vm3, %v3342_v12, 0.0 }
 0x6dd   :  { %779 = vadd.xlane.f32.xlu0 %v778_v13 }
 0x6f3   :  { %790 = vrot.lane.b32.xlu0 %v3608_v10, %s3428_s4 }
 0x6f7   :  { %875 = vrot.lane.b32.xlu0 %v3612_v11, %s3430_s6 }
 0x706   :  { %v371_v18 = vpop.xlane.xlu1 %370 }
 0x707   :  { %v373_v21 = vsub.f32 %v362_v0, %v371_v18  ;;  %v130_v18 = vld [vmem:[%s4175_s1 + $0x130] sm:$0xff] }
 0x709   :  { %v376_v22 = vmul.f32 1.442695, %v373_v21  ;;  %v129_v21 = vld [vmem:[%s4175_s1 + $0x128] sm:$0xff] }
 0x70b   :  { %3343 = vpow2.f32 %v376_v22 }
 0x716   :  { %367 = vmax.xlane.f32.xlu0 %v366_v25 }
 0x718   :  { %v3706_v26 = vpop.eup %3343 }
 0x719   :  { %v381_v27 = vsel %vm365_vm3, %v3706_v26, 0.0 }
 0x71a   :  { %382 = vadd.xlane.f32.xlu1 %v381_v27 }
 0x762   :  { %v783_v28 = vpop.xlane.xlu0 %782 }
 0x763   :  { %3345 = vrcp.f32 %v783_v28 }
 0x766   :  { %v780_v29 = vpop.xlane.xlu0 %779 }
 0x767   :  { %3347 = vrcp.f32 %v780_v29 }
 0x76a   :  { %v791_v30 = vpop.permute.xlu0 %790 }
 0x76b   :  { %3099 = vmatprep.subr.mxu1 %v791_v30 }
 0x76c   :  { %3100 = vmatpush3.msra.mxu1 %v791_v30 }
 0x76d   :  { %3101 = vmatprep.subr.mxu1 %v789_v14 }
 0x76e   :  { %3102 = vmatpush3.msra.mxu1 %v789_v14  ;;  %v876_v35 = vpop.permute.xlu0 %875 }
 0x76f   :  { %3106 = vmatprep.subr.msk.mxu1 %vm281_vm2, %v882_v15 }
 0x770   :  { %v3346_v19 = vpop.eup %3345 }
 0x771   :  { %v787_v34 = vmul.f32 %v3346_v19, %v3340_v8 }
 0x774   :  { %v3348_v32 = vpop.eup %3347 }
 0x775   :  { %v786_v33 = vmul.f32 %v3348_v32, %v3342_v12 }
 0x777   :  { %3103 = vmatprep.mubr.msk.f32.mxu1 %vm365_vm3, %v786_v33 }
 0x778   :  { %3104 = vmatmul.mubr.msk.f32.vlgmr.msra.gmra.mxu1 %vm365_vm3, %v787_v34 }
 0x779   :  { %3107 = vmatpush3.xpose.msk.msra.mxu1 %vm281_vm2, %v882_v15  ;;  %3110 = vmatprep.mubr.msk.f32.mxu1 %vm281_vm2, %v876_v35 }
 0x77a   :  { %3108 = vmatprep.subr.msk.mxu1 %vm281_vm2, %v880_v16 }
 0x77d   :  { %3109 = vmatpush3.xpose.msk.msra.mxu1 %vm281_vm2, %v880_v16  ;;  %v132_v16 = vld [vmem:[%s4175_s1 + $0x140] sm:$0xff] }
 0x77e   :  { %3120 = vmatprep.subr.mxu1 %v132_v16 }
 0x780   :  { %3111 = vmatmul.mubr.msk.f32.vlgmr.msra.gmra.mxu1 %vm281_vm2, %v878_v17  ;;  %v131_v17 = vld [vmem:[%s4175_s1 + $0x138] sm:$0xff] }
 0x781   :  { %3121 = vmatpush3.msra.mxu1 %v132_v16 }
 0x782   :  { %3122 = vmatprep.subr.mxu1 %v131_v17 }
 0x783   :  { %3123 = vmatpush3.msra.mxu1 %v131_v17 }
 0x784   :  { %3124 = vmatprep.subr.mxu1 %v130_v18 }
 0x785   :  { %3125 = vmatpush3.msra.mxu1 %v130_v18 }
 0x786   :  { %3126 = vmatprep.subr.mxu1 %v129_v21 }
 0x787   :  { %3127 = vmatpush3.msra.mxu1 %v129_v21 }
 0x79f   :  { %v368_v37 = vpop.xlane.xlu0 %367 }
 0x7a0   :  { %v372_v38 = vsub.f32 %v357_v24, %v368_v37 }
 0x7a2   :  { %v374_v39 = vmul.f32 1.442695, %v372_v38 }
 0x7a3   :  { %v383_v5 = vpop.xlane.xlu1 %382 }
 0x7a4   :  { %3349 = vpow2.f32 %v374_v39 }
 0x7b1   :  { %v3350_v48 = vpop.eup %3349 }
 0x7b2   :  { %v378_v49 = vsel %vm365_vm3, %v3350_v48, 0.0 }
 0x838   :  { %v3105_v40 = vpop.f32.mrf.mxu1 }
 0x83a   :  { %v866_v41 = vpop.f32.mrf.mxu1 }
 0x840   :  { %v3112_v42 = vpop.f32.mrf.mxu1 }
 0x841   :  { %v963_v45 = vadd.f32 %v3112_v42, %v3645_v20 }
 0x842   :  { %v957_v43 = vpop.f32.mrf.mxu1 }
 0x843   :  { %v958_v44 = vadd.f32 %v957_v43, %v3651_v23  ;;  %v969_v47 = vsel %vm365_vm3, %v963_v45, -inf }
 0x845   :  { %v966_v46 = vsel %vm365_vm3, %v958_v44, -inf }
 0x846   :  { %967 = vmax.xlane.f32.xlu0 %v966_v46 }
 0x84a   :  { %970 = vmax.xlane.f32.xlu0 %v969_v47 }
 0x84e   :  { %379 = vadd.xlane.f32.xlu0 %v378_v49 }
 0x8cf   :  { %v968_v50 = vpop.xlane.xlu0 %967 }
 0x8d0   :  { %v972_v51 = vsub.f32 %v958_v44, %v968_v50 }
 0x8d2   :  { %v974_v54 = vmul.f32 1.442695, %v972_v51 }
 0x8d3   :  { %v971_v55 = vpop.xlane.xlu0 %970 }
 0x8d4   :  { %3351 = vpow2.f32 %v974_v54  ;;  %v973_v56 = vsub.f32 %v963_v45, %v971_v55 }
 0x8d6   :  { %v976_v57 = vmul.f32 1.442695, %v973_v56 }
 0x8d7   :  { %v380_v58 = vpop.xlane.xlu0 %379 }
 0x8d8   :  { %3353 = vpow2.f32 %v976_v57 }
 0x8d9   :  { %3355 = vrcp.f32 %v380_v58 }
 0x8da   :  { %3357 = vrcp.f32 %v383_v5 }
 0x8e1   :  { %v3352_v59 = vpop.eup %3351 }
 0x8e2   :  { %v978_v0 = vsel %vm365_vm3, %v3352_v59, 0.0 }
 0x8e3   :  { %979 = vadd.xlane.f32.xlu0 %v978_v0  ;;  %v136_v0 = vld [vmem:[%s4175_s1 + $0x160] sm:$0xff] }
 0x8e5   :  { %v3354_v1 = vpop.eup %3353 }
 0x8e6   :  { %v3356_v2 = vpop.eup %3355  ;;  %v981_v3 = vsel %vm365_vm3, %v3354_v1, 0.0 }
 0x8e7   :  { %982 = vadd.xlane.f32.xlu1 %v981_v3  ;;  %v386_v4 = vmul.f32 %v3356_v2, %v3350_v48  ;;  %v134_v2 = vld [vmem:[%s4175_s1 + $0x150] sm:$0xff]  ;;  %v133_v3 = vld [vmem:[%s4175_s1 + $0x148] sm:$0xff] }
 0x8e9   :  { %3075 = vmatprep.mubr.msk.f32.mxu0 %vm365_vm3, %v386_v4 }
 0x8f8   :  { %388 = vrot.lane.b32.xlu1 %v3612_v11, %s3431_s7 }
 0x8f9   :  { %390 = vrot.lane.b32.xlu0 %v3608_v10, %s3431_s7 }
 0x8fc   :  { %990 = vrot.lane.b32.xlu1 %v3608_v10, %s3432_s8 }
 0x8fd   :  { %1077 = vrot.lane.b32.xlu0 %v3680_v53, %s3433_s9  ;;  %v3358_v53 = vpop.eup %3357 }
 0x900   :  { %988 = vrot.lane.b32.xlu1 %v3612_v11, %s3432_s8  ;;  %v387_v11 = vmul.f32 %v3358_v53, %v3706_v26 }
 0x901   :  { %1085 = vrot.lane.b32.xlu0 %v866_v41, %s3434_s10 }
 0x904   :  { %1079 = vrot.lane.b32.xlu1 %v3678_v52, %s3433_s9 }
 0x908   :  { %1087 = vrot.lane.b32.xlu1 %v3105_v40, %s3434_s10  ;;  %v1191_v40 = vsub.s32 4, %v3591_v60 }
 0x90a   :  { %v1192_v41 = vrot.slane %v3597_v62, %v1191_v40 }
 0x96c   :  { %v980_v6 = vpop.xlane.xlu0 %979 }
 0x96d   :  { %3359 = vrcp.f32 %v980_v6 }
 0x970   :  { %v983_v10 = vpop.xlane.xlu1 %982  ;;  %v391_v7 = vpop.permute.xlu0 %390 }
 0x971   :  { %3361 = vrcp.f32 %v983_v10  ;;  %3071 = vmatprep.subr.mxu0 %v391_v7 }
 0x972   :  { %3072 = vmatpush3.msra.mxu0 %v391_v7 }
 0x974   :  { %v389_v8 = vpop.permute.xlu1 %388  ;;  %v1078_v28 = vpop.permute.xlu0 %1077 }
 0x975   :  { %3073 = vmatprep.subr.mxu0 %v389_v8 }
 0x976   :  { %3074 = vmatpush3.msra.mxu0 %v389_v8  ;;  %v1223_v8 = vsub.s32 2, %v3591_v60 }
 0x977   :  { %3076 = vmatmul.mubr.msk.f32.vlgmr.msra.gmra.mxu0 %vm365_vm3, %v387_v11  ;;  %v1229_v11 = vsub.s32 3, %v3591_v60 }
 0x978   :  { %v991_v52 = vpop.permute.xlu1 %990  ;;  %v1086_v30 = vpop.permute.xlu0 %1085 }
 0x979   :  { %3113 = vmatprep.subr.mxu0 %v991_v52 }
 0x97a   :  { %v3360_v9 = vpop.eup %3359  ;;  %3114 = vmatpush3.msra.mxu0 %v991_v52  ;;  %v1224_v52 = vrot.slane %v3597_v62, %v1223_v8 }
 0x97b   :  { %v986_v12 = vmul.f32 %v3360_v9, %v3352_v59 }
 0x97c   :  { %v989_v13 = vpop.permute.xlu1 %988 }
 0x97d   :  { %3115 = vmatprep.subr.mxu0 %v989_v13  ;;  %3117 = vmatprep.mubr.msk.f32.mxu0 %vm365_vm3, %v986_v12 }
 0x97e   :  { %v3362_v14 = vpop.eup %3361  ;;  %3116 = vmatpush3.msra.mxu0 %v989_v13  ;;  %v1230_v13 = vrot.slane %v3597_v62, %v1229_v11 }
 0x97f   :  { %v987_v15 = vmul.f32 %v3362_v14, %v3354_v1  ;;  %v135_v1 = vld [vmem:[%s4175_s1 + $0x158] sm:$0xff]  ;;  %3131 = vmatprep.subr.mxu0 %v136_v0 }
 0x980   :  { %v1080_v27 = vpop.permute.xlu1 %1079 }
 0x981   :  { %3118 = vmatmul.mubr.msk.f32.vlgmr.msra.gmra.mxu0 %vm365_vm3, %v987_v15 }
 0x982   :  { %3132 = vmatpush3.msra.mxu0 %v136_v0 }
 0x983   :  { %3133 = vmatprep.subr.mxu0 %v135_v1 }
 0x984   :  { %v1088_v29 = vpop.permute.xlu1 %1087  ;;  %3134 = vmatpush3.msra.mxu0 %v135_v1 }
 0x985   :  { %3135 = vmatprep.subr.mxu0 %v134_v2 }
 0x986   :  { %3136 = vmatpush3.msra.mxu0 %v134_v2 }
 0x987   :  { %3137 = vmatprep.subr.mxu0 %v133_v3 }
 0x988   :  { %3138 = vmatpush3.msra.mxu0 %v133_v3 }
 0xa37   :  { %v3077_v22 = vpop.f32.mrf.mxu0 }
 0xa38   :  { %v1100_v32 = vsel %vm281_vm2, %v3077_v22, %v1080_v27  ;;  %v152_v22 = vld [vmem:[%s4175_s1 + $0x1e0] sm:$0xff] }
 0xa39   :  { %v466_v24 = vpop.f32.mrf.mxu0  ;;  %v1102_v37 = vsel %vm365_vm3, %v1100_v32, %v1088_v29  ;;  %3142 = vmatprep.subr.mxu1 %v152_v22  ;;  %v148_v27 = vld [vmem:[%s4175_s1 + $0x1c0] sm:$0xff]  ;;  %v146_v29 = vld [vmem:[%s4175_s1 + $0x1b0] sm:$0xff]  ;;  %v143_v32 = vld [vmem:[%s4175_s1 + $0x198] sm:$0xff] }
 0xa3a   :  { %v1099_v19 = vsel %vm281_vm2, %v466_v24, %v1078_v28  ;;  %v151_v24 = vld [vmem:[%s4175_s1 + $0x1d8] sm:$0xff] }
 0xa3b   :  { %v1101_v34 = vsel %vm365_vm3, %v1099_v19, %v1086_v30  ;;  %v147_v28 = vld [vmem:[%s4175_s1 + $0x1b8] sm:$0xff]  ;;  %v145_v30 = vld [vmem:[%s4175_s1 + $0x1a8] sm:$0xff]  ;;  %v144_v19 = vld [vmem:[%s4175_s1 + $0x1a0] sm:$0xff] }
 0xa41   :  { %v3119_v25 = vpop.f32.mrf.mxu0 }
 0xa42   :  { %1095 = vrot.lane.b32.xlu1 %v3119_v25, %s3435_s18  ;;  %v150_v25 = vld [vmem:[%s4175_s1 + $0x1d0] sm:$0xff] }
 0xa43   :  { %v1066_v26 = vpop.f32.mrf.mxu0 }
 0xa44   :  { %1093 = vrot.lane.b32.xlu0 %v1066_v26, %s3435_s18  ;;  %v149_v26 = vld [vmem:[%s4175_s1 + $0x1c8] sm:$0xff] }
 0xab4   :  { %v1096_v33 = vpop.permute.xlu1 %1095 }
 0xab5   :  { %v1105_v39 = vsel %vm1103_vm4, %v1102_v37, %v1096_v33  ;;  %v142_v33 = vld [vmem:[%s4175_s1 + $0x190] sm:$0xff]  ;;  %v139_v37 = vld [vmem:[%s4175_s1 + $0x178] sm:$0xff] }
 0xab6   :  { %v1094_v35 = vpop.permute.xlu0 %1093 }
 0xab7   :  { %v1104_v38 = vsel %vm1103_vm4, %v1101_v34, %v1094_v35  ;;  %v141_v34 = vld [vmem:[%s4175_s1 + $0x188] sm:$0xff]  ;;  %v140_v35 = vld [vmem:[%s4175_s1 + $0x180] sm:$0xff] }
 0xab8   :  { %3128 = vmatprep.mubr.msk.f32.mxu1 %vm154_vm1, %v1104_v38  ;;  %v138_v38 = vld [vmem:[%s4175_s1 + $0x170] sm:$0xff] }
 0xab9   :  { %3129 = vmatmul.mubr.msk.f32.vlgmr.msra.gmra.mxu1 %vm154_vm1, %v1105_v39  ;;  %v137_v39 = vld [vmem:[%s4175_s1 + $0x168] sm:$0xff] }
 0xaba   :  { %3143 = vmatpush3.msra.mxu1 %v152_v22 }
 0xabb   :  { %3144 = vmatprep.subr.mxu1 %v151_v24 }
 0xabc   :  { %3145 = vmatpush3.msra.mxu1 %v151_v24 }
 0xabd   :  { %3146 = vmatprep.subr.mxu1 %v150_v25 }
 0xabe   :  { %3147 = vmatpush3.msra.mxu1 %v150_v25 }
 0xabf   :  { %3148 = vmatprep.subr.mxu1 %v149_v26 }
 0xac0   :  { %3149 = vmatpush3.msra.mxu1 %v149_v26 }
 0xac1   :  { %3150 = vmatprep.subr.mxu1 %v148_v27 }
 0xac2   :  { %3151 = vmatpush3.msra.mxu1 %v148_v27  ;;  %v1422_v27 = vld [vmem:[%s4175_s1 + $0x208] sm:$0xff] }
 0xac3   :  { %3152 = vmatprep.subr.mxu1 %v147_v28  ;;  %3177 = vmatprep.subr.mxu0 %v1422_v27 }
 0xac4   :  { %3153 = vmatpush3.msra.mxu1 %v147_v28  ;;  %v1421_v28 = vld [vmem:[%s4175_s1 + $0x200] sm:$0xff] }
 0xac5   :  { %3154 = vmatprep.subr.mxu1 %v146_v29 }
 0xac6   :  { %3155 = vmatpush3.msra.mxu1 %v146_v29  ;;  %v1420_v29 = vld [vmem:[%s4175_s1 + $0x1f8] sm:$0xff] }
 0xac7   :  { %3156 = vmatprep.subr.mxu1 %v145_v30 }
 0xac8   :  { %3157 = vmatpush3.msra.mxu1 %v145_v30  ;;  %v1419_v30 = vld [vmem:[%s4175_s1 + $0x1f0] sm:$0xff] }
 0xac9   :  { %3158 = vmatprep.subr.mxu1 %v144_v19 }
 0xaca   :  { %3159 = vmatpush3.msra.mxu1 %v144_v19 }
 0xacb   :  { %3160 = vmatprep.subr.mxu1 %v143_v32 }
 0xacc   :  { %3161 = vmatpush3.msra.mxu1 %v143_v32 }
 0xacd   :  { %3162 = vmatprep.subr.mxu1 %v142_v33 }
 0xace   :  { %3163 = vmatpush3.msra.mxu1 %v142_v33 }
 0xacf   :  { %3164 = vmatprep.subr.mxu1 %v141_v34 }
 0xad0   :  { %3165 = vmatpush3.msra.mxu1 %v141_v34 }
 0xad1   :  { %3166 = vmatprep.subr.mxu1 %v140_v35 }
 0xad2   :  { %3167 = vmatpush3.msra.mxu1 %v140_v35 }
 0xad3   :  { %3168 = vmatprep.subr.mxu1 %v139_v37 }
 0xad4   :  { %3169 = vmatpush3.msra.mxu1 %v139_v37 }
 0xad5   :  { %3170 = vmatprep.subr.mxu1 %v138_v38 }
 0xad6   :  { %3171 = vmatpush3.msra.mxu1 %v138_v38  ;;  %v3891_v38 = vld [vmem:[%s4175_s1 + $0x2d0] sm:$0xff] }
 0xad7   :  { %3172 = vmatprep.subr.mxu1 %v137_v39 }
 0xad8   :  { %3173 = vmatpush3.msra.mxu1 %v137_v39 }
 0xb79   :  { %v3130_v42 = vpop.f32.mrf.mxu1 }
 0xb7a   :  { %v1188_v43 = vadd.f32 %v3130_v42, %v3571_v36 }
 0xb7b   :  { %v1178_v44 = vpop.f32.mrf.mxu1 }
 0xb7c   :  { %v3771_v45 = vadd.f32 %v1192_v41, %v1188_v43  ;;  %v1187_v46 = vadd.f32 %v1178_v44, %v3564_v31 }
 0xb7e   :  { %v3774_v47 = vadd.f32 %v1192_v41, %v1187_v46  ;;  %v1198_v48 = vsel %vm154_vm1, %v3771_v45, 0.0  ;;  %v1235_v41 = vsub.s32 6, %v3591_v60 }
 0xb7f   :  { %1199 = vadd.xlane.f32.xlu1 %v1198_v48 }
 0xb80   :  { %v1195_v49 = vsel %vm154_vm1, %v3774_v47, 0.0  ;;  %v1236_v42 = vrot.slane %v3597_v62, %v1235_v41 }
 0xb81   :  { %1196 = vadd.xlane.f32.xlu0 %v1195_v49 }
 0xc08   :  { %v1200_v50 = vpop.xlane.xlu1 %1199 }
 0xc09   :  { %v1202_v51 = vmul.f32 0.03125, %v1200_v50 }
 0xc0a   :  { %v1197_v54 = vpop.xlane.xlu0 %1196 }
 0xc0b   :  { %v1201_v55 = vmul.f32 0.03125, %v1197_v54  ;;  %v1204_v36 = vsub.f32 %v3771_v45, %v1202_v51 }
 0xc0d   :  { %v1203_v56 = vsub.f32 %v3774_v47, %v1201_v55  ;;  %v1206_v58 = vmul.f32 %v1204_v36, %v1204_v36 }
 0xc0f   :  { %v1205_v57 = vmul.f32 %v1203_v56, %v1203_v56  ;;  %v1210_v59 = vsel %vm154_vm1, %v1206_v58, 0.0 }
 0xc11   :  { %v1207_v31 = vsel %vm154_vm1, %v1205_v57, 0.0 }
 0xc12   :  { %1208 = vadd.xlane.f32.xlu0 %v1207_v31 }
 0xc16   :  { %1211 = vadd.xlane.f32.xlu0 %v1210_v59 }
 0xc9b   :  { %v1209_v4 = vpop.xlane.xlu0 %1208 }
 0xc9c   :  { %v1213_v5 = vmul.f32 0.03125, %v1209_v4 }
 0xc9e   :  { %v1215_v6 = vadd.f32 1e-05, %v1213_v5 }
 0xc9f   :  { %v1212_v10 = vpop.xlane.xlu0 %1211 }
 0xca0   :  { %3363 = vrsqrt.f32 %v1215_v6  ;;  %v1214_v7 = vmul.f32 0.03125, %v1212_v10  ;;  %v1415_v10 = vsub.s32 5, %v3591_v60 }
 0xca2   :  { %v1216_v53 = vadd.f32 1e-05, %v1214_v7  ;;  %v1416_v7 = vrot.slane %v3597_v62, %v1415_v10 }
 0xca4   :  { %3365 = vrsqrt.f32 %v1216_v53 }
 0xcad   :  { %v3364_v9 = vpop.eup %3363 }
 0xcae   :  { %v1219_v12 = vmul.f32 %v3364_v9, %v1203_v56 }
 0xcb0   :  { %v1225_v14 = vmul.f32 %v1224_v52, %v1219_v12 }
 0xcb1   :  { %v3366_v15 = vpop.eup %3365 }
 0xcb2   :  { %v1220_v16 = vmul.f32 %v3366_v15, %v1204_v36  ;;  %v1231_v17 = vadd.f32 %v1230_v13, %v1225_v14 }
 0xcb4   :  { %v1226_v18 = vmul.f32 %v1224_v52, %v1220_v16  ;;  %3139 = vmatprep.mubr.msk.f32.mxu0 %vm154_vm1, %v1231_v17 }
 0xcb6   :  { %v1232_v21 = vadd.f32 %v1230_v13, %v1226_v18 }
 0xcb8   :  { %3140 = vmatmul.mubr.msk.f32.vlgmr.msra.gmra.mxu0 %vm154_vm1, %v1232_v21 }
 0xcb9   :  { %3178 = vmatpush3.msra.mxu0 %v1422_v27 }
 0xcba   :  { %3179 = vmatprep.subr.mxu0 %v1421_v28 }
 0xcbb   :  { %3180 = vmatpush3.msra.mxu0 %v1421_v28 }
 0xcbc   :  { %3181 = vmatprep.subr.mxu0 %v1420_v29 }
 0xcbd   :  { %3182 = vmatpush3.msra.mxu0 %v1420_v29 }
 0xcbe   :  { %3183 = vmatprep.subr.mxu0 %v1419_v30 }
 0xcbf   :  { %3184 = vmatpush3.msra.mxu0 %v1419_v30 }
 0xd78   :  { %v3141_v43 = vpop.f32.mrf.mxu0 }
 0xd79   :  { %v1315_v44 = vadd.f32 %v3141_v43, %v1236_v42 }
 0xd7a   :  { %v1309_v46 = vpop.f32.mrf.mxu0 }
 0xd7b   :  { %v1319_v48 = vmul.f32 %v1315_v44, %v1315_v44  ;;  %v1310_v49 = vadd.f32 %v1309_v46, %v1236_v42  ;;  %v1477_v42 = vrot.slane %v3891_v38, %v184_v61 }
 0xd7d   :  { %v1321_v50 = vmul.f32 %v1319_v48, %v1315_v44  ;;  %v1318_v51 = vmul.f32 %v1310_v49, %v1310_v49 }
 0xd7f   :  { %v1323_v54 = vmul.f32 0.044715, %v1321_v50  ;;  %v1320_v55 = vmul.f32 %v1318_v51, %v1310_v49 }
 0xd81   :  { %v1325_v36 = vadd.f32 %v1323_v54, %v1315_v44  ;;  %v1322_v56 = vmul.f32 0.044715, %v1320_v55 }
 0xd83   :  { %v1327_v57 = vmul.f32 0.7978846, %v1325_v36  ;;  %v1324_v31 = vadd.f32 %v1322_v56, %v1310_v49 }
 0xd85   :  { %3367 = vtanh.f32 %v1327_v57  ;;  %v1326_v58 = vmul.f32 0.7978846, %v1324_v31 }
 0xd87   :  { %3369 = vtanh.f32 %v1326_v58 }
 0xd92   :  { %v3368_v59 = vpop.eup %3367 }
 0xd93   :  { %v1331_v0 = vadd.f32 1.0, %v3368_v59 }
 0xd94   :  { %v3370_v1 = vpop.eup %3369 }
 0xd95   :  { %v1330_v2 = vadd.f32 1.0, %v3370_v1  ;;  %v1333_v3 = vmul.f32 0.5, %v1331_v0 }
 0xd97   :  { %v1332_v4 = vmul.f32 0.5, %v1330_v2  ;;  %v1335_v6 = vmul.f32 %v1333_v3, %v1315_v44 }
 0xd99   :  { %v1334_v5 = vmul.f32 %v1332_v4, %v1310_v49  ;;  %v1483_v49 = vrot.slane %v3891_v38, %v190_v63 }
 0xd9b   :  { %3174 = vmatprep.mubr.f32.mxu1 %v1334_v5 }
 0xd9c   :  { %3175 = vmatmul.mubr.f32.vlgmr.msra.gmra.mxu1 %v1335_v6 }
 0xe5c   :  { %v3176_v53 = vpop.f32.mrf.mxu1 }
 0xe5d   :  { %v1412_v52 = vadd.f32 %v3176_v53, %v3771_v45 }
 0xe5e   :  { %v1402_v9 = vpop.f32.mrf.mxu1 }
 0xe5f   :  { %v3863_v12 = vadd.f32 %v1416_v7, %v1412_v52  ;;  %v1411_v13 = vadd.f32 %v1402_v9, %v3774_v47 }
 0xe61   :  { %v3866_v14 = vadd.f32 %v1416_v7, %v1411_v13  ;;  %v1451_v15 = vsel %vm154_vm1, %v3863_v12, 0.0 }
 0xe62   :  { %1452 = vadd.xlane.f32.xlu1 %v1451_v15 }
 0xe63   :  { %v1448_v16 = vsel %vm154_vm1, %v3866_v14, 0.0 }
 0xe64   :  { %1449 = vadd.xlane.f32.xlu0 %v1448_v16 }
 0xeeb   :  { %v1453_v17 = vpop.xlane.xlu1 %1452 }
 0xeec   :  { %v1455_v62 = vmul.f32 0.03125, %v1453_v17 }
 0xeed   :  { %v1450_v18 = vpop.xlane.xlu0 %1449 }
 0xeee   :  { %v1457_v45 = vsub.f32 %v3863_v12, %v1455_v62  ;;  %v1454_v21 = vmul.f32 0.03125, %v1450_v18 }
 0xef0   :  { %v1456_v22 = vsub.f32 %v3866_v14, %v1454_v21  ;;  %v1459_v24 = vmul.f32 %v1457_v45, %v1457_v45 }
 0xef2   :  { %v1463_v47 = vsel %vm154_vm1, %v1459_v24, 0.0  ;;  %v1458_v25 = vmul.f32 %v1456_v22, %v1456_v22 }
 0xef3   :  { %1464 = vadd.xlane.f32.xlu1 %v1463_v47 }
 0xef4   :  { %v1460_v26 = vsel %vm154_vm1, %v1458_v25, 0.0 }
 0xef5   :  { %1461 = vadd.xlane.f32.xlu0 %v1460_v26 }
 0xf7c   :  { %v1465_v19 = vpop.xlane.xlu1 %1464 }
 0xf7d   :  { %v1467_v32 = vmul.f32 0.03125, %v1465_v19 }
 0xf7e   :  { %v1462_v33 = vpop.xlane.xlu0 %1461 }
 0xf7f   :  { %v1469_v34 = vadd.f32 1e-05, %v1467_v32  ;;  %v1466_v35 = vmul.f32 0.03125, %v1462_v33  ;;  %v3964_v32 = vld [vmem:[%s4175_s1 + $0x18] sm:$0xff] }
 0xf81   :  { %3371 = vrsqrt.f32 %v1469_v34  ;;  %v1468_v37 = vadd.f32 1e-05, %v1466_v35 }
 0xf83   :  { %3373 = vrsqrt.f32 %v1468_v37  ;;  %v3970_v37 = vld [vmem:[%s4175_s1 + $0x10] sm:$0xff] }
 0xf8e   :  { %v3372_v39 = vpop.eup %3371 }
 0xf8f   :  { %v1473_v43 = vmul.f32 %v3372_v39, %v1457_v45 }
 0xf90   :  { %v3374_v44 = vpop.eup %3373 }
 0xf91   :  { %v1472_v46 = vmul.f32 %v3374_v44, %v1456_v22  ;;  %v1479_v48 = vmul.f32 %v1477_v42, %v1473_v43 }
 0xf93   :  { %v1478_v50 = vmul.f32 %v1477_v42, %v1472_v46  ;;  %v1485_v54 = vadd.f32 %v1483_v49, %v1479_v48 }
 0xf95   :  { %v1484_v51 = vadd.f32 %v1483_v49, %v1478_v50 }
 0xf97   :  { %3185 = vmatprep.mubr.msk.f32.mxu0 %vm154_vm1, %v1484_v51 }
 0xf98   :  { %3186 = vmatmul.mubr.msk.f32.vlgmr.msra.gmra.mxu0 %vm154_vm1, %v1485_v54 }
0x1058   :  { %v3901_v55 = vpop.f32.mrf.mxu0 }
0x1059   :  { %1571 = vrot.lane.b32.xlu0 %v3901_v55, %s3422_s22 }
0x105a   :  { %v3905_v61 = vpop.f32.mrf.mxu0 }
0x105b   :  { %1569 = vrot.lane.b32.xlu1 %v3905_v61, %s3422_s22  ;;  %3192 = vmatprep.mubr.msk.f32.mxu0 %vm281_vm2, %v3905_v61 }
0x10cb   :  { %v1572_v63 = vpop.permute.xlu0 %1571 }
0x10cc   :  { %3188 = vmatprep.subr.msk.mxu0 %vm281_vm2, %v1572_v63 }
0x10cd   :  { %3189 = vmatpush3.xpose.msk.msra.mxu0 %vm281_vm2, %v1572_v63  ;;  %v1570_v36 = vpop.permute.xlu1 %1569 }
0x10ce   :  { %3190 = vmatprep.subr.msk.mxu0 %vm281_vm2, %v1570_v36 }
0x10d1   :  { %3191 = vmatpush3.xpose.msk.msra.mxu0 %vm281_vm2, %v1570_v36 }
0x10d4   :  { %3193 = vmatmul.mubr.msk.f32.vlgmr.msra.gmra.mxu0 %vm281_vm2, %v3901_v55 }
0x1194   :  { %v3194_v56 = vpop.f32.mrf.mxu0 }
0x1195   :  { %v1653_v57 = vadd.f32 %v3194_v56, %v3645_v20 }
0x1196   :  { %v1647_v31 = vpop.f32.mrf.mxu0 }
0x1197   :  { %v1648_v58 = vadd.f32 %v1647_v31, %v3651_v23  ;;  %v1659_v59 = vsel %vm365_vm3, %v1653_v57, -inf }
0x1198   :  { %1660 = vmax.xlane.f32.xlu0 %v1659_v59 }
0x1199   :  { %v1656_v0 = vsel %vm365_vm3, %v1648_v58, -inf }
0x119a   :  { %1657 = vmax.xlane.f32.xlu1 %v1656_v0 }
0x11ab   :  { %1678 = vrot.lane.b32.xlu1 %v3905_v61, %s3431_s7 }
0x11ae   :  { %1680 = vrot.lane.b32.xlu0 %v3901_v55, %s3431_s7 }
0x11af   :  { %1771 = vrot.lane.b32.xlu1 %v3901_v55, %s3424_s24 }
0x11b3   :  { %1769 = vrot.lane.b32.xlu1 %v3905_v61, %s3424_s24 }
0x1221   :  { %v1661_v20 = vpop.xlane.xlu0 %1660 }
0x1222   :  { %v1663_v23 = vsub.f32 %v1653_v57, %v1661_v20 }
0x1223   :  { %v1658_v1 = vpop.xlane.xlu1 %1657 }
0x1224   :  { %v1666_v2 = vmul.f32 1.442695, %v1663_v23  ;;  %v1662_v3 = vsub.f32 %v1648_v58, %v1658_v1 }
0x1225   :  { %v1681_v4 = vpop.permute.xlu0 %1680 }
0x1226   :  { %3375 = vpow2.f32 %v1666_v2  ;;  %v1664_v5 = vmul.f32 1.442695, %v1662_v3  ;;  %3195 = vmatprep.subr.mxu0 %v1681_v4 }
0x1227   :  { %3196 = vmatpush3.msra.mxu0 %v1681_v4  ;;  %v1679_v6 = vpop.permute.xlu1 %1678 }
0x1228   :  { %3377 = vpow2.f32 %v1664_v5  ;;  %3197 = vmatprep.subr.mxu0 %v1679_v6 }
0x1229   :  { %3198 = vmatpush3.msra.mxu0 %v1679_v6 }
0x122b   :  { %v1772_v7 = vpop.permute.xlu1 %1771 }
0x122c   :  { %3202 = vmatprep.subr.msk.mxu0 %vm281_vm2, %v1772_v7 }
0x122f   :  { %v1770_v15 = vpop.permute.xlu1 %1769 }
0x1233   :  { %v3376_v53 = vpop.eup %3375 }
0x1234   :  { %v1671_v52 = vsel %vm365_vm3, %v3376_v53, 0.0 }
0x1235   :  { %v3378_v9 = vpop.eup %3377  ;;  %1672 = vadd.xlane.f32.xlu1 %v1671_v52 }
0x1236   :  { %v1668_v13 = vsel %vm365_vm3, %v3378_v9, 0.0 }
0x1237   :  { %1669 = vadd.xlane.f32.xlu0 %v1668_v13 }
0x1246   :  { %1765 = vrot.lane.b32.xlu1 %v3905_v61, %s3423_s23 }
0x124a   :  { %1969 = vrot.lane.b32.xlu1 %v3905_v61, %s3426_s30 }
0x124d   :  { %1971 = vrot.lane.b32.xlu0 %v3901_v55, %s3426_s30 }
0x124e   :  { %1967 = vrot.lane.b32.xlu1 %v3901_v55, %s3427_s3 }
0x1251   :  { %1767 = vrot.lane.b32.xlu0 %v3901_v55, %s3423_s23 }
0x1255   :  { %1965 = vrot.lane.b32.xlu0 %v3905_v61, %s3427_s3 }
0x12be   :  { %v1673_v16 = vpop.xlane.xlu1 %1672 }
0x12bf   :  { %3379 = vrcp.f32 %v1673_v16 }
0x12c0   :  { %v1670_v17 = vpop.xlane.xlu0 %1669 }
0x12c1   :  { %3381 = vrcp.f32 %v1670_v17 }
0x12c2   :  { %v1766_v62 = vpop.permute.xlu1 %1765 }
0x12c4   :  { %v1972_v18 = vpop.permute.xlu0 %1971 }
0x12c5   :  { %3216 = vmatprep.subr.msk.mxu1 %vm281_vm2, %v1972_v18 }
0x12c6   :  { %3217 = vmatpush3.xpose.msk.msra.mxu1 %vm281_vm2, %v1972_v18  ;;  %v1970_v45 = vpop.permute.xlu1 %1969 }
0x12c7   :  { %3218 = vmatprep.subr.msk.mxu1 %vm281_vm2, %v1970_v45 }
0x12c8   :  { %v1768_v21 = vpop.permute.xlu0 %1767 }
0x12ca   :  { %3219 = vmatpush3.xpose.msk.msra.mxu1 %vm281_vm2, %v1970_v45  ;;  %v1968_v47 = vpop.permute.xlu1 %1967 }
0x12cc   :  { %v1966_v22 = vpop.permute.xlu0 %1965  ;;  %v3380_v24 = vpop.eup %3379 }
0x12cd   :  { %3220 = vmatprep.mubr.msk.f32.mxu1 %vm281_vm2, %v1966_v22  ;;  %v1677_v27 = vmul.f32 %v3380_v24, %v3376_v53 }
0x12ce   :  { %v3382_v25 = vpop.eup %3381  ;;  %3221 = vmatmul.mubr.msk.f32.vlgmr.msra.gmra.mxu1 %vm281_vm2, %v1968_v47 }
0x12cf   :  { %v1676_v26 = vmul.f32 %v3382_v25, %v3378_v9 }
0x12d1   :  { %3199 = vmatprep.mubr.msk.f32.mxu0 %vm365_vm3, %v1676_v26 }
0x12d2   :  { %3200 = vmatmul.mubr.msk.f32.vlgmr.msra.gmra.mxu0 %vm365_vm3, %v1677_v27 }
0x12d3   :  { %3203 = vmatpush3.xpose.msk.msra.mxu0 %vm281_vm2, %v1772_v7  ;;  %3206 = vmatprep.mubr.msk.f32.mxu0 %vm281_vm2, %v1766_v62 }
0x12d4   :  { %3204 = vmatprep.subr.msk.mxu0 %vm281_vm2, %v1770_v15 }
0x12d7   :  { %3205 = vmatpush3.xpose.msk.msra.mxu0 %vm281_vm2, %v1770_v15 }
0x12da   :  { %3207 = vmatmul.mubr.msk.f32.vlgmr.msra.gmra.mxu0 %vm281_vm2, %v1768_v21 }
0x138e   :  { %v3222_v29 = vpop.f32.mrf.mxu1 }
0x138f   :  { %v2053_v46 = vadd.f32 %v3964_v32, %v3222_v29 }
0x1390   :  { %v2047_v34 = vpop.f32.mrf.mxu1 }
0x1391   :  { %v2048_v43 = vadd.f32 %v3970_v37, %v2047_v34  ;;  %v2059_v49 = vsel %vm365_vm3, %v2053_v46, -inf }
0x1392   :  { %v3957_v28 = vpop.f32.mrf.mxu0 }
0x1393   :  { %v2056_v48 = vsel %vm365_vm3, %v2048_v43, -inf }
0x1394   :  { %v3959_v30 = vpop.f32.mrf.mxu0 }
0x139a   :  { %v3208_v19 = vpop.f32.mrf.mxu0 }
0x139b   :  { %v1853_v33 = vadd.f32 %v3964_v32, %v3208_v19 }
0x139c   :  { %v1847_v35 = vpop.f32.mrf.mxu0 }
0x139d   :  { %v1848_v39 = vadd.f32 %v3970_v37, %v1847_v35  ;;  %v1859_v42 = vsel %vm365_vm3, %v1853_v33, -inf }
0x139e   :  { %1860 = vmax.xlane.f32.xlu1 %v1859_v42 }
0x139f   :  { %v1856_v44 = vsel %vm365_vm3, %v1848_v39, -inf }
0x13a0   :  { %1857 = vmax.xlane.f32.xlu0 %v1856_v44 }
0x13a4   :  { %2057 = vmax.xlane.f32.xlu0 %v2056_v48 }
0x13a8   :  { %2060 = vmax.xlane.f32.xlu0 %v2059_v49 }
0x1427   :  { %v1861_v54 = vpop.xlane.xlu1 %1860 }
0x1428   :  { %v1863_v56 = vsub.f32 %v1853_v33, %v1861_v54 }
0x1429   :  { %v1858_v50 = vpop.xlane.xlu0 %1857 }
0x142a   :  { %v1862_v51 = vsub.f32 %v1848_v39, %v1858_v50  ;;  %v1866_v0 = vmul.f32 1.442695, %v1863_v56 }
0x142c   :  { %v1864_v57 = vmul.f32 1.442695, %v1862_v51 }
0x142d   :  { %v2058_v63 = vpop.xlane.xlu0 %2057 }
0x142e   :  { %v2062_v36 = vsub.f32 %v2048_v43, %v2058_v63 }
0x1430   :  { %v2064_v31 = vmul.f32 1.442695, %v2062_v36 }
0x1431   :  { %v2061_v58 = vpop.xlane.xlu0 %2060 }
0x1432   :  { %3383 = vpow2.f32 %v2064_v31  ;;  %v2063_v59 = vsub.f32 %v2053_v46, %v2061_v58 }
0x1433   :  { %3385 = vpow2.f32 %v1864_v57 }
0x1434   :  { %v2066_v20 = vmul.f32 1.442695, %v2063_v59 }
0x1436   :  { %3387 = vpow2.f32 %v2066_v20 }
0x1437   :  { %3389 = vpow2.f32 %v1866_v0 }
0x143f   :  { %v3384_v23 = vpop.eup %3383 }
0x1440   :  { %v2068_v1 = vsel %vm365_vm3, %v3384_v23, 0.0  ;;  %v3386_v2 = vpop.eup %3385 }
0x1441   :  { %2069 = vadd.xlane.f32.xlu0 %v2068_v1  ;;  %v1868_v4 = vsel %vm365_vm3, %v3386_v2, 0.0 }
0x1443   :  { %v3388_v3 = vpop.eup %3387 }
0x1444   :  { %v2071_v5 = vsel %vm365_vm3, %v3388_v3, 0.0  ;;  %v3390_v6 = vpop.eup %3389 }
0x1445   :  { %1869 = vadd.xlane.f32.xlu0 %v1868_v4  ;;  %2072 = vadd.xlane.f32.xlu1 %v2071_v5  ;;  %v1871_v7 = vsel %vm365_vm3, %v3390_v6, 0.0  ;;  %v1425_v4 = vld [vmem:[%s4175_s1 + $0x220] sm:$0xff]  ;;  %v1424_v5 = vld [vmem:[%s4175_s1 + $0x218] sm:$0xff] }
0x1449   :  { %1872 = vadd.xlane.f32.xlu1 %v1871_v7 }
0x145a   :  { %1878 = vrot.lane.b32.xlu1 %v3905_v61, %s3425_s29 }
0x145b   :  { %1880 = vrot.lane.b32.xlu0 %v3901_v55, %s3425_s29 }
0x145e   :  { %2080 = vrot.lane.b32.xlu1 %v3901_v55, %s3428_s4 }
0x145f   :  { %2171 = vrot.lane.b32.xlu0 %v3901_v55, %s3429_s5 }
0x1462   :  { %2078 = vrot.lane.b32.xlu1 %v3905_v61, %s3428_s4 }
0x1463   :  { %2165 = vrot.lane.b32.xlu0 %v3905_v61, %s3430_s6 }
0x1466   :  { %2169 = vrot.lane.b32.xlu1 %v3905_v61, %s3429_s5 }
0x146a   :  { %2167 = vrot.lane.b32.xlu1 %v3901_v55, %s3430_s6 }
0x14ca   :  { %v2070_v53 = vpop.xlane.xlu0 %2069 }
0x14ce   :  { %v1870_v52 = vpop.xlane.xlu0 %1869  ;;  %v2073_v9 = vpop.xlane.xlu1 %2072 }
0x14cf   :  { %3391 = vrcp.f32 %v1870_v52 }
0x14d0   :  { %3393 = vrcp.f32 %v2070_v53 }
0x14d2   :  { %v1881_v13 = vpop.permute.xlu0 %1880  ;;  %v1873_v15 = vpop.xlane.xlu1 %1872 }
0x14d3   :  { %3395 = vrcp.f32 %v1873_v15  ;;  %3209 = vmatprep.subr.mxu0 %v1881_v13 }
0x14d4   :  { %3210 = vmatpush3.msra.mxu0 %v1881_v13  ;;  %3397 = vrcp.f32 %v2073_v9 }
0x14d6   :  { %v1879_v16 = vpop.permute.xlu1 %1878  ;;  %v2172_v22 = vpop.permute.xlu0 %2171 }
0x14d7   :  { %3211 = vmatprep.subr.mxu0 %v1879_v16 }
0x14d8   :  { %3212 = vmatpush3.msra.mxu0 %v1879_v16 }
0x14da   :  { %v2081_v17 = vpop.permute.xlu1 %2080  ;;  %v2166_v29 = vpop.permute.xlu0 %2165 }
0x14db   :  { %3223 = vmatprep.subr.mxu0 %v2081_v17 }
0x14dc   :  { %v3392_v62 = vpop.eup %3391 }
0x14dd   :  { %v1876_v18 = vmul.f32 %v3392_v62, %v3386_v2  ;;  %v3394_v45 = vpop.eup %3393 }
0x14de   :  { %v2079_v25 = vpop.permute.xlu1 %2078  ;;  %v2076_v26 = vmul.f32 %v3394_v45, %v3384_v23 }
0x14df   :  { %3213 = vmatprep.mubr.msk.f32.mxu0 %vm365_vm3, %v1876_v18 }
0x14e0   :  { %v3396_v21 = vpop.eup %3395 }
0x14e1   :  { %v1877_v24 = vmul.f32 %v3396_v21, %v3390_v6  ;;  %v3398_v47 = vpop.eup %3397  ;;  %v1423_v6 = vld [vmem:[%s4175_s1 + $0x210] sm:$0xff] }
0x14e2   :  { %v2077_v27 = vmul.f32 %v3398_v47, %v3388_v3  ;;  %v2170_v19 = vpop.permute.xlu1 %2169 }
0x14e3   :  { %3214 = vmatmul.mubr.msk.f32.vlgmr.msra.gmra.mxu0 %vm365_vm3, %v1877_v24 }
0x14e4   :  { %3224 = vmatpush3.msra.mxu0 %v2081_v17  ;;  %3227 = vmatprep.mubr.msk.f32.mxu0 %vm365_vm3, %v2076_v26 }
0x14e5   :  { %3225 = vmatprep.subr.mxu0 %v2079_v25 }
0x14e6   :  { %3226 = vmatpush3.msra.mxu0 %v2079_v25  ;;  %v2168_v33 = vpop.permute.xlu1 %2167 }
0x14e7   :  { %3230 = vmatprep.subr.msk.mxu0 %vm281_vm2, %v2172_v22  ;;  %3228 = vmatmul.mubr.msk.f32.vlgmr.msra.gmra.mxu0 %vm365_vm3, %v2077_v27 }
0x14e8   :  { %3231 = vmatpush3.xpose.msk.msra.mxu0 %vm281_vm2, %v2172_v22  ;;  %3234 = vmatprep.mubr.msk.f32.mxu0 %vm281_vm2, %v2166_v29 }
0x14e9   :  { %3232 = vmatprep.subr.msk.mxu0 %vm281_vm2, %v2170_v19 }
0x14ec   :  { %3233 = vmatpush3.xpose.msk.msra.mxu0 %vm281_vm2, %v2170_v19 }
0x14ef   :  { %3235 = vmatmul.mubr.msk.f32.vlgmr.msra.gmra.mxu0 %vm281_vm2, %v2168_v33 }
0x15a3   :  { %v3215_v34 = vpop.f32.mrf.mxu0 }
0x15a5   :  { %v1956_v35 = vpop.f32.mrf.mxu0 }
0x15a7   :  { %v3229_v39 = vpop.f32.mrf.mxu0 }
0x15a9   :  { %v2156_v42 = vpop.f32.mrf.mxu0 }
0x15af   :  { %v3236_v43 = vpop.f32.mrf.mxu0 }
0x15b0   :  { %v2253_v44 = vadd.f32 %v3964_v32, %v3236_v43 }
0x15b1   :  { %v2247_v46 = vpop.f32.mrf.mxu0 }
0x15b2   :  { %v2248_v48 = vadd.f32 %v3970_v37, %v2247_v46  ;;  %v2259_v49 = vsel %vm365_vm3, %v2253_v44, -inf }
0x15b3   :  { %2260 = vmax.xlane.f32.xlu1 %v2259_v49  ;;  %v1429_v49 = vld [vmem:[%s4175_s1 + $0x240] sm:$0xff] }
0x15b4   :  { %v2256_v50 = vsel %vm365_vm3, %v2248_v48, -inf }
0x15b5   :  { %2257 = vmax.xlane.f32.xlu0 %v2256_v50  ;;  %v1428_v50 = vld [vmem:[%s4175_s1 + $0x238] sm:$0xff] }
0x15c4   :  { %2278 = vrot.lane.b32.xlu1 %v3905_v61, %s3432_s8 }
0x15c8   :  { %2367 = vrot.lane.b32.xlu1 %v1956_v35, %s3433_s9 }
0x15cc   :  { %2369 = vrot.lane.b32.xlu1 %v3215_v34, %s3433_s9 }
0x15d0   :  { %2377 = vrot.lane.b32.xlu1 %v3229_v39, %s3434_s10 }
0x163c   :  { %v2261_v51 = vpop.xlane.xlu1 %2260 }
0x163d   :  { %v2263_v32 = vsub.f32 %v2253_v44, %v2261_v51  ;;  %v1427_v51 = vld [vmem:[%s4175_s1 + $0x230] sm:$0xff] }
0x163e   :  { %v2258_v54 = vpop.xlane.xlu0 %2257 }
0x163f   :  { %v2266_v63 = vmul.f32 1.442695, %v2263_v32  ;;  %v2262_v37 = vsub.f32 %v2248_v48, %v2258_v54  ;;  %v1430_v48 = vld [vmem:[%s4175_s1 + $0x248] sm:$0xff] }
0x1640   :  { %v2279_v20 = vpop.permute.xlu1 %2278  ;;  %3255 = vmatprep.subr.mxu0 %v1430_v48 }
0x1641   :  { %3399 = vpow2.f32 %v2266_v63  ;;  %v2264_v36 = vmul.f32 1.442695, %v2262_v37  ;;  %3256 = vmatpush3.msra.mxu0 %v1430_v48  ;;  %v2705_v48 = vrot.slane %v3891_v38, %v1415_v10 }
0x1642   :  { %3257 = vmatprep.subr.mxu0 %v1429_v49 }
0x1643   :  { %3401 = vpow2.f32 %v2264_v36  ;;  %3258 = vmatpush3.msra.mxu0 %v1429_v49 }
0x1644   :  { %v2368_v52 = vpop.permute.xlu1 %2367  ;;  %3259 = vmatprep.subr.mxu0 %v1428_v50 }
0x1645   :  { %v2389_v16 = vsel %vm281_vm2, %v3959_v30, %v2368_v52  ;;  %v2481_v30 = vrot.slane %v3891_v38, %v1191_v40  ;;  %3260 = vmatpush3.msra.mxu0 %v1428_v50  ;;  %v1437_v52 = vld [vmem:[%s4175_s1 + $0x280] sm:$0xff] }
0x1646   :  { %3261 = vmatprep.subr.mxu0 %v1427_v51 }
0x1647   :  { %3262 = vmatpush3.msra.mxu0 %v1427_v51 }
0x1648   :  { %v2370_v9 = vpop.permute.xlu1 %2369 }
0x1649   :  { %v2390_v62 = vsel %vm281_vm2, %v3957_v28, %v2370_v9  ;;  %v1436_v9 = vld [vmem:[%s4175_s1 + $0x278] sm:$0xff] }
0x164c   :  { %v2378_v13 = vpop.permute.xlu1 %2377 }
0x164d   :  { %v2392_v21 = vsel %vm365_vm3, %v2390_v62, %v2378_v13  ;;  %v1435_v13 = vld [vmem:[%s4175_s1 + $0x270] sm:$0xff] }
0x164e   :  { %v3400_v56 = vpop.eup %3399  ;;  %v1431_v62 = vld [vmem:[%s4175_s1 + $0x250] sm:$0xff] }
0x164f   :  { %v2271_v57 = vsel %vm365_vm3, %v3400_v56, 0.0 }
0x1650   :  { %v3402_v31 = vpop.eup %3401  ;;  %2272 = vadd.xlane.f32.xlu0 %v2271_v57  ;;  %v2513_v57 = vrot.slane %v3891_v38, %v1223_v8  ;;  %v1446_v8 = vld [vmem:[%s4175_s1 + $0x2c8] sm:$0xff] }
0x1651   :  { %v2268_v61 = vsel %vm365_vm3, %v3402_v31, 0.0 }
0x1654   :  { %2269 = vadd.xlane.f32.xlu0 %v2268_v61 }
0x166a   :  { %2280 = vrot.lane.b32.xlu0 %v3901_v55, %s3432_s8  ;;  %v1426_v55 = vld [vmem:[%s4175_s1 + $0x228] sm:$0xff] }
0x166e   :  { %2375 = vrot.lane.b32.xlu0 %v2156_v42, %s3434_s10 }
0x16d9   :  { %v2273_v58 = vpop.xlane.xlu0 %2272 }
0x16da   :  { %3403 = vrcp.f32 %v2273_v58  ;;  %v2519_v58 = vrot.slane %v3891_v38, %v1229_v11  ;;  %v1445_v11 = vld [vmem:[%s4175_s1 + $0x2c0] sm:$0xff] }
0x16dd   :  { %v2270_v59 = vpop.xlane.xlu0 %2269 }
0x16de   :  { %3405 = vrcp.f32 %v2270_v59 }
0x16e1   :  { %v2281_v0 = vpop.permute.xlu0 %2280 }
0x16e2   :  { %3237 = vmatprep.subr.mxu1 %v2281_v0 }
0x16e3   :  { %3238 = vmatpush3.msra.mxu1 %v2281_v0 }
0x16e4   :  { %3239 = vmatprep.subr.mxu1 %v2279_v20 }
0x16e5   :  { %3240 = vmatpush3.msra.mxu1 %v2279_v20  ;;  %v2376_v15 = vpop.permute.xlu0 %2375 }
0x16e6   :  { %3244 = vmatprep.subr.mxu1 %v1426_v55  ;;  %v2391_v18 = vsel %vm365_vm3, %v2389_v16, %v2376_v15  ;;  %v1434_v15 = vld [vmem:[%s4175_s1 + $0x268] sm:$0xff]  ;;  %v1433_v16 = vld [vmem:[%s4175_s1 + $0x260] sm:$0xff] }
0x16e7   :  { %v3404_v23 = vpop.eup %3403 }
0x16e8   :  { %v2277_v3 = vmul.f32 %v3404_v23, %v3400_v56 }
0x16eb   :  { %v3406_v1 = vpop.eup %3405 }
0x16ec   :  { %v2276_v2 = vmul.f32 %v3406_v1, %v3402_v31 }
0x16ee   :  { %3241 = vmatprep.mubr.msk.f32.mxu1 %vm365_vm3, %v2276_v2 }
0x16ef   :  { %3242 = vmatmul.mubr.msk.f32.vlgmr.msra.gmra.mxu1 %vm365_vm3, %v2277_v3  ;;  %v1444_v3 = vld [vmem:[%s4175_s1 + $0x2b8] sm:$0xff] }
0x16f0   :  { %3245 = vmatpush3.msra.mxu1 %v1426_v55  ;;  %v1443_v55 = vld [vmem:[%s4175_s1 + $0x2b0] sm:$0xff] }
0x16f1   :  { %3246 = vmatprep.subr.mxu1 %v1425_v4 }
0x16f2   :  { %3247 = vmatpush3.msra.mxu1 %v1425_v4  ;;  %v1442_v4 = vld [vmem:[%s4175_s1 + $0x2a8] sm:$0xff] }
0x16f3   :  { %3248 = vmatprep.subr.mxu1 %v1424_v5 }
0x16f4   :  { %3249 = vmatpush3.msra.mxu1 %v1424_v5  ;;  %v1441_v5 = vld [vmem:[%s4175_s1 + $0x2a0] sm:$0xff] }
0x16f5   :  { %3250 = vmatprep.subr.mxu1 %v1423_v6 }
0x16f6   :  { %3251 = vmatpush3.msra.mxu1 %v1423_v6  ;;  %v1440_v6 = vld [vmem:[%s4175_s1 + $0x298] sm:$0xff] }
0x16f7   :  { %3266 = vmatprep.subr.mxu1 %v1446_v8 }
0x17af   :  { %v3243_v7 = vpop.f32.mrf.mxu1 }
0x17b0   :  { %2385 = vrot.lane.b32.xlu1 %v3243_v7, %s3435_s18  ;;  %v1439_v7 = vld [vmem:[%s4175_s1 + $0x290] sm:$0xff] }
0x17b1   :  { %v2356_v53 = vpop.f32.mrf.mxu1 }
0x17b2   :  { %2383 = vrot.lane.b32.xlu0 %v2356_v53, %s3435_s18  ;;  %v1438_v53 = vld [vmem:[%s4175_s1 + $0x288] sm:$0xff] }
0x1822   :  { %v2386_v17 = vpop.permute.xlu1 %2385 }
0x1823   :  { %v2394_v24 = vsel %vm1103_vm4, %v2392_v21, %v2386_v17  ;;  %v1432_v17 = vld [vmem:[%s4175_s1 + $0x258] sm:$0xff] }
0x1824   :  { %v2384_v45 = vpop.permute.xlu0 %2383 }
0x1825   :  { %v2393_v22 = vsel %vm1103_vm4, %v2391_v18, %v2384_v45  ;;  %v2525_v18 = vrot.slane %v3891_v38, %v1235_v41 }
0x1826   :  { %3252 = vmatprep.mubr.msk.f32.mxu1 %vm154_vm1, %v2393_v22 }
0x1827   :  { %3253 = vmatmul.mubr.msk.f32.vlgmr.msra.gmra.mxu1 %vm154_vm1, %v2394_v24 }
0x1828   :  { %3267 = vmatpush3.msra.mxu1 %v1446_v8 }
0x1829   :  { %3268 = vmatprep.subr.mxu1 %v1445_v11 }
0x182a   :  { %3269 = vmatpush3.msra.mxu1 %v1445_v11 }
0x182b   :  { %3270 = vmatprep.subr.mxu1 %v1444_v3 }
0x182c   :  { %3271 = vmatpush3.msra.mxu1 %v1444_v3 }
0x182d   :  { %3272 = vmatprep.subr.mxu1 %v1443_v55 }
0x182e   :  { %3273 = vmatpush3.msra.mxu1 %v1443_v55 }
0x182f   :  { %3274 = vmatprep.subr.mxu1 %v1442_v4 }
0x1830   :  { %3275 = vmatpush3.msra.mxu1 %v1442_v4 }
0x1831   :  { %3276 = vmatprep.subr.mxu1 %v1441_v5 }
0x1832   :  { %3277 = vmatpush3.msra.mxu1 %v1441_v5  ;;  %v2906_v5 = vld [vmem:[%s4175_s1 + $0x100] ss:$0 sm:$0xff] }
0x1833   :  { %3278 = vmatprep.subr.mxu1 %v1440_v6 }
0x1834   :  { %3279 = vmatpush3.msra.mxu1 %v1440_v6 }
0x1835   :  { %3280 = vmatprep.subr.mxu1 %v1439_v7 }
0x1836   :  { %3281 = vmatpush3.msra.mxu1 %v1439_v7 }
0x1837   :  { %3282 = vmatprep.subr.mxu1 %v1438_v53 }
0x1838   :  { %3283 = vmatpush3.msra.mxu1 %v1438_v53 }
0x1839   :  { %3284 = vmatprep.subr.mxu1 %v1437_v52 }
0x183a   :  { %3285 = vmatpush3.msra.mxu1 %v1437_v52 }
0x183b   :  { %3286 = vmatprep.subr.mxu1 %v1436_v9 }
0x183c   :  { %3287 = vmatpush3.msra.mxu1 %v1436_v9  ;;  %v2907_v9 = vld [vmem:[%s4175_s1 + $0x101] ss:$0 sm:$0xff] }
0x183d   :  { %3288 = vmatprep.subr.mxu1 %v1435_v13 }
0x183e   :  { %3289 = vmatpush3.msra.mxu1 %v1435_v13 }
0x183f   :  { %3290 = vmatprep.subr.mxu1 %v1434_v15 }
0x1840   :  { %3291 = vmatpush3.msra.mxu1 %v1434_v15 }
0x1841   :  { %3292 = vmatprep.subr.mxu1 %v1433_v16 }
0x1842   :  { %3293 = vmatpush3.msra.mxu1 %v1433_v16 }
0x1843   :  { %3294 = vmatprep.subr.mxu1 %v1432_v17 }
0x1844   :  { %3295 = vmatpush3.msra.mxu1 %v1432_v17  ;;  %v2908_v17 = vld [vmem:[%s4175_s1 + $0x102] ss:$0 sm:$0xff] }
0x1845   :  { %3296 = vmatprep.subr.mxu1 %v1431_v62 }
0x1846   :  { %3297 = vmatpush3.msra.mxu1 %v1431_v62 }
0x18e7   :  { %v3254_v47 = vpop.f32.mrf.mxu1 }
0x18e8   :  { %v2477_v28 = vadd.f32 %v3254_v47, %v3863_v12 }
0x18e9   :  { %v2467_v25 = vpop.f32.mrf.mxu1 }
0x18ea   :  { %v4053_v26 = vadd.f32 %v2481_v30, %v2477_v28  ;;  %v2476_v27 = vadd.f32 %v2467_v25, %v3866_v14 }
0x18ec   :  { %v4056_v29 = vadd.f32 %v2481_v30, %v2476_v27  ;;  %v2487_v19 = vsel %vm154_vm1, %v4053_v26, 0.0 }
0x18ed   :  { %2488 = vadd.xlane.f32.xlu1 %v2487_v19 }
0x18ee   :  { %v2484_v33 = vsel %vm154_vm1, %v4056_v29, 0.0 }
0x18ef   :  { %2485 = vadd.xlane.f32.xlu0 %v2484_v33 }
0x1976   :  { %v2489_v34 = vpop.xlane.xlu1 %2488 }
0x1977   :  { %v2491_v40 = vmul.f32 0.03125, %v2489_v34 }
0x1978   :  { %v2486_v35 = vpop.xlane.xlu0 %2485 }
0x1979   :  { %v2490_v39 = vmul.f32 0.03125, %v2486_v35  ;;  %v2493_v12 = vsub.f32 %v4053_v26, %v2491_v40 }
0x197b   :  { %v2492_v42 = vsub.f32 %v4056_v29, %v2490_v39  ;;  %v2495_v44 = vmul.f32 %v2493_v12, %v2493_v12 }
0x197d   :  { %v2494_v43 = vmul.f32 %v2492_v42, %v2492_v42  ;;  %v2499_v46 = vsel %vm154_vm1, %v2495_v44, 0.0 }
0x197f   :  { %v2496_v14 = vsel %vm154_vm1, %v2494_v43, 0.0 }
0x1980   :  { %2497 = vadd.xlane.f32.xlu0 %v2496_v14 }
0x1984   :  { %2500 = vadd.xlane.f32.xlu0 %v2499_v46 }
0x1a09   :  { %v2498_v32 = vpop.xlane.xlu0 %2497 }
0x1a0a   :  { %v2502_v54 = vmul.f32 0.03125, %v2498_v32 }
0x1a0c   :  { %v2504_v63 = vadd.f32 1e-05, %v2502_v54 }
0x1a0d   :  { %v2501_v37 = vpop.xlane.xlu0 %2500 }
0x1a0e   :  { %3407 = vrsqrt.f32 %v2504_v63  ;;  %v2503_v36 = vmul.f32 0.03125, %v2501_v37 }
0x1a10   :  { %v2505_v56 = vadd.f32 1e-05, %v2503_v36 }
0x1a12   :  { %3409 = vrsqrt.f32 %v2505_v56 }
0x1a1b   :  { %v3408_v31 = vpop.eup %3407 }
0x1a1c   :  { %v2508_v61 = vmul.f32 %v3408_v31, %v2492_v42 }
0x1a1e   :  { %v2514_v59 = vmul.f32 %v2513_v57, %v2508_v61 }
0x1a1f   :  { %v3410_v0 = vpop.eup %3409 }
0x1a20   :  { %v2509_v20 = vmul.f32 %v3410_v0, %v2493_v12  ;;  %v2520_v23 = vadd.f32 %v2519_v58, %v2514_v59  ;;  %v2714_v59 = vld [vmem:[%s4175_s1 + $0xf8] sm:$0xff]  ;;  %v2713_v0 = vld [vmem:[%s4175_s1 + $0xf0] sm:$0xff] }
0x1a21   :  { %3301 = vmatprep.subr.mxu0 %v2714_v59 }
0x1a22   :  { %v2515_v1 = vmul.f32 %v2513_v57, %v2509_v20  ;;  %3263 = vmatprep.mubr.msk.f32.mxu0 %vm154_vm1, %v2520_v23  ;;  %v2712_v20 = vld [vmem:[%s4175_s1 + $0xe8] sm:$0xff]  ;;  %v2711_v23 = vld [vmem:[%s4175_s1 + $0xe0] sm:$0xff] }
0x1a24   :  { %v2521_v2 = vadd.f32 %v2519_v58, %v2515_v1 }
0x1a26   :  { %3264 = vmatmul.mubr.msk.f32.vlgmr.msra.gmra.mxu0 %vm154_vm1, %v2521_v2 }
0x1a27   :  { %3302 = vmatpush3.msra.mxu0 %v2714_v59 }
0x1a28   :  { %3303 = vmatprep.subr.mxu0 %v2713_v0 }
0x1a29   :  { %3304 = vmatpush3.msra.mxu0 %v2713_v0 }
0x1a2a   :  { %3305 = vmatprep.subr.mxu0 %v2712_v20 }
0x1a2b   :  { %3306 = vmatpush3.msra.mxu0 %v2712_v20 }
0x1a2c   :  { %3307 = vmatprep.subr.mxu0 %v2711_v23 }
0x1a2d   :  { %3308 = vmatpush3.msra.mxu0 %v2711_v23 }
0x1ae6   :  { %v3265_v45 = vpop.f32.mrf.mxu0 }
0x1ae7   :  { %v2604_v21 = vadd.f32 %v3265_v45, %v2525_v18 }
0x1ae8   :  { %v2598_v22 = vpop.f32.mrf.mxu0 }
0x1ae9   :  { %v2608_v24 = vmul.f32 %v2604_v21, %v2604_v21  ;;  %v2599_v30 = vadd.f32 %v2598_v22, %v2525_v18 }
0x1aeb   :  { %v2610_v47 = vmul.f32 %v2608_v24, %v2604_v21  ;;  %v2607_v28 = vmul.f32 %v2599_v30, %v2599_v30 }
0x1aed   :  { %v2612_v25 = vmul.f32 0.044715, %v2610_v47  ;;  %v2609_v27 = vmul.f32 %v2607_v28, %v2599_v30 }
0x1aef   :  { %v2614_v19 = vadd.f32 %v2612_v25, %v2604_v21  ;;  %v2611_v33 = vmul.f32 0.044715, %v2609_v27 }
0x1af1   :  { %v2616_v34 = vmul.f32 0.7978846, %v2614_v19  ;;  %v2613_v40 = vadd.f32 %v2611_v33, %v2599_v30 }
0x1af3   :  { %3411 = vtanh.f32 %v2616_v34  ;;  %v2615_v35 = vmul.f32 0.7978846, %v2613_v40 }
0x1af5   :  { %3413 = vtanh.f32 %v2615_v35 }
0x1b00   :  { %v3412_v39 = vpop.eup %3411 }
0x1b01   :  { %v2620_v12 = vadd.f32 1.0, %v3412_v39 }
0x1b02   :  { %v3414_v42 = vpop.eup %3413 }
0x1b03   :  { %v2619_v41 = vadd.f32 1.0, %v3414_v42  ;;  %v2622_v43 = vmul.f32 0.5, %v2620_v12 }
0x1b05   :  { %v2621_v14 = vmul.f32 0.5, %v2619_v41  ;;  %v2624_v46 = vmul.f32 %v2622_v43, %v2604_v21 }
0x1b07   :  { %v2623_v44 = vmul.f32 %v2621_v14, %v2599_v30 }
0x1b09   :  { %3298 = vmatprep.mubr.f32.mxu1 %v2623_v44 }
0x1b0a   :  { %3299 = vmatmul.mubr.f32.vlgmr.msra.gmra.mxu1 %v2624_v46 }
0x1bca   :  { %v3300_v49 = vpop.f32.mrf.mxu1 }
0x1bcb   :  { %v2701_v50 = vadd.f32 %v3300_v49, %v4053_v26 }
0x1bcc   :  { %v2691_v51 = vpop.f32.mrf.mxu1 }
0x1bcd   :  { %v2707_v32 = vadd.f32 %v2705_v48, %v2701_v50  ;;  %v2700_v54 = vadd.f32 %v2691_v51, %v4056_v29 }
0x1bcf   :  { %v2706_v63 = vadd.f32 %v2705_v48, %v2700_v54  ;;  %v2718_v37 = vsel %vm154_vm1, %v2707_v32, 0.0 }
0x1bd0   :  { %2719 = vadd.xlane.f32.xlu1 %v2718_v37 }
0x1bd1   :  { %v2715_v36 = vsel %vm154_vm1, %v2706_v63, 0.0 }
0x1bd2   :  { %2716 = vadd.xlane.f32.xlu0 %v2715_v36 }
0x1c59   :  { %v2720_v56 = vpop.xlane.xlu1 %2719 }
0x1c5a   :  { %v2722_v57 = vmul.f32 0.03125, %v2720_v56 }
0x1c5b   :  { %v2717_v31 = vpop.xlane.xlu0 %2716 }
0x1c5c   :  { %v2724_v60 = vsub.f32 %v2707_v32, %v2722_v57  ;;  %v2721_v61 = vmul.f32 0.03125, %v2717_v31 }
0x1c5e   :  { %v2723_v10 = vsub.f32 %v2706_v63, %v2721_v61  ;;  %v2726_v38 = vmul.f32 %v2724_v60, %v2724_v60 }
0x1c60   :  { %v2730_v26 = vsel %vm154_vm1, %v2726_v38, 0.0  ;;  %v2725_v58 = vmul.f32 %v2723_v10, %v2723_v10 }
0x1c61   :  { %2731 = vadd.xlane.f32.xlu1 %v2730_v26 }
0x1c62   :  { %v2727_v29 = vsel %vm154_vm1, %v2725_v58, 0.0 }
0x1c63   :  { %2728 = vadd.xlane.f32.xlu0 %v2727_v29 }
0x1cea   :  { %v2732_v1 = vpop.xlane.xlu1 %2731 }
0x1ceb   :  { %v2734_v2 = vmul.f32 0.03125, %v2732_v1 }
0x1cec   :  { %v2729_v8 = vpop.xlane.xlu0 %2728 }
0x1ced   :  { %v2736_v11 = vadd.f32 1e-05, %v2734_v2  ;;  %v2733_v3 = vmul.f32 0.03125, %v2729_v8 }
0x1cef   :  { %3415 = vrsqrt.f32 %v2736_v11  ;;  %v2735_v55 = vadd.f32 1e-05, %v2733_v3 }
0x1cf1   :  { %3417 = vrsqrt.f32 %v2735_v55 }
0x1cfc   :  { %v3416_v4 = vpop.eup %3415 }
0x1cfd   :  { %v2740_v6 = vmul.f32 %v3416_v4, %v2724_v60 }
0x1cfe   :  { %v3418_v7 = vpop.eup %3417 }
0x1cff   :  { %v2739_v53 = vmul.f32 %v3418_v7, %v2723_v10  ;;  %v2746_v52 = vmul.f32 %v2906_v5, %v2740_v6 }
0x1d01   :  { %v2745_v13 = vmul.f32 %v2906_v5, %v2739_v53  ;;  %v2752_v16 = vadd.f32 %v2907_v9, %v2746_v52 }
0x1d03   :  { %v2751_v15 = vadd.f32 %v2907_v9, %v2745_v13 }
0x1d05   :  { %3309 = vmatprep.mubr.msk.f32.mxu0 %vm154_vm1, %v2751_v15 }
0x1d06   :  { %3310 = vmatmul.mubr.msk.f32.vlgmr.msra.gmra.mxu0 %vm154_vm1, %v2752_v16 }
0x1dc6   :  { %v3311_v62 = vpop.f32.mrf.mxu0 }
0x1dc7   :  { %v2835_v18 = vadd.f32 %v3311_v62, %v2908_v17 }
0x1dc8   :  { %v2829_v45 = vpop.f32.mrf.mxu0 }
0x1dc9   :  { %2839 = vst [vmem:[%s4177_s2 + $0x8] sm:$0xff] %v2835_v18  ;;  %v2830_v21 = vadd.f32 %v2908_v17, %v2829_v45 }
0x1dcb   :  { %2838 = vst [vmem:[%s4177_s2] sm:$0xff] %v2830_v21 }

</bundles_post_ra>
